<compile_context>
chip_gen: v7x
topology: tpu7x:2x2x1
jax: 0.10.0
libtpu: 0.0.40
codegen_flags: <defaults>
</compile_context>

<pallas_src>
import functools

import jax
import jax.numpy as jnp
from jax import lax
from jax.experimental import pallas as pl
from jax.experimental.pallas import tpu as pltpu

f32 = jnp.float32
bf16 = jnp.bfloat16

# Raised scoped-VMEM limit (safe on v5e/v6e/v7x); row axis parallel for megacore.
MOSAIC_PARAMS = pltpu.CompilerParams(
    dimension_semantics=("parallel",),
    vmem_limit_bytes=32 * 1024 * 1024,
)


# ------------------------------------------------------------- kernels -------

def sage1_kernel(a_ref, x_ref, wl_ref, wr_ref, b_ref, h1_ref):
    """SAGEConv layer 1 + ReLU for one row tile.  A streamed (tm, N); x resident."""
    mm = lambda a, b: jnp.dot(a, b, preferred_element_type=f32)
    tm = a_ref.shape[0]
    row0 = pl.multiple_of(pl.program_id(0) * tm, 8)

    agg = mm(a_ref[...], x_ref[...])                       # (tm, F) f32
    x_blk = x_ref[pl.ds(row0, tm), :]                      # (tm, F) bf16 (free slice)
    # Two accumulating dots instead of concat([agg, x]) @ stacked_W.
    h = (mm(agg.astype(bf16), wl_ref[...]) + mm(x_blk, wr_ref[...]) + b_ref[...])
    h1_ref[...] = jnp.maximum(h, 0.0).astype(h1_ref.dtype)


def player_emb_kernel(a_ref, h1_ref, hist_ref, wl2_ref, wr2_ref, wih_ref, whh_ref,
                      wproj_ref, wattg_ref, wfcp_ref, bias_ref, pe_ref):
    """SAGEConv layer 2 + LSTM + attention fusion + fc_player for one row tile."""
    mm = lambda a, b: jnp.dot(a, b, preferred_element_type=f32)
    cast = lambda v: v.astype(bf16)

    tm = a_ref.shape[0]
    hdim = wl2_ref.shape[1]
    ldim = whh_ref.shape[0]
    cdim = wfcp_ref.shape[1]
    t_steps = hist_ref.shape[0]
    feat = hist_ref.shape[2]
    row0 = pl.multiple_of(pl.program_id(0) * tm, 8)

    # Packed biases (f32): row 0 = SAGE2, row 1 = LSTM (b_ih+b_hh), row 2 = proj_ext,
    # row 3 = fc_player.
    b2 = bias_ref[0:1, :hdim]
    b_lstm = bias_ref[1:2, :4 * ldim]
    bproj = bias_ref[2:3, :hdim + 1]
    bfcp = bias_ref[3:4, :cdim]

    # ---- SAGEConv 2 + ReLU --------------------------------------------------
    h1_all = h1_ref[...]                                   # (N, H) bf16, resident
    h1_blk = h1_ref[pl.ds(row0, tm), :]                    # (tm, H)
    agg2 = mm(a_ref[...], h1_all)                          # (tm, H) f32
    x_gnn = jnp.maximum(mm(cast(agg2), wl2_ref[...]) + mm(h1_blk, wr2_ref[...]) + b2,
                        0.0)                               # (tm, H) f32

    # ---- LSTM over padded histories (gate order i, f, g, o) -----------------
    # All T input projections as ONE matmul; bias added once; per-step inputs are
    # free sublane row blocks.  (T, tm, F) -> (T*tm, F) is a no-op relayout
    # because tm is a multiple of 8.
    hist2d = hist_ref[...].reshape(t_steps * tm, feat)     # bf16
    xp_all = mm(hist2d, wih_ref[...]) + b_lstm             # (T*tm, 4L) f32

    whh = whh_ref[...]
    h = jnp.zeros((tm, ldim), f32)
    c = jnp.zeros((tm, ldim), f32)
    for t in range(t_steps):                               # T small & static: unrolled
        g = xp_all[t * tm:(t + 1) * tm, :] + mm(cast(h), whh)   # one MXU op / step
        i_g = jax.nn.sigmoid(g[:, 0 * ldim:1 * ldim])
        f_g = jax.nn.sigmoid(g[:, 1 * ldim:2 * ldim])
        g_g = jnp.tanh(g[:, 2 * ldim:3 * ldim])
        o_g = jax.nn.sigmoid(g[:, 3 * ldim:4 * ldim])
        c = f_g * c + i_g * g_g
        h = o_g * jnp.tanh(c)

    # ---- lstm_proj (+ folded lstm-side attention logit column) --------------
    proj_ext = mm(cast(h), wproj_ref[...]) + bproj         # (tm, H+1) f32
    lstm_proj = proj_ext[:, :hdim]
    logit_l = proj_ext[:, hdim:hdim + 1]

    # 2-way softmax == sigmoid of the logit difference; column 0 weights x_gnn.
    att0 = jax.nn.sigmoid(mm(cast(x_gnn), wattg_ref[...]) + logit_l)
    fused = att0 * x_gnn + (1.0 - att0) * lstm_proj
    pe = mm(cast(fused), wfcp_ref[...]) + bfcp             # (tm, C)
    pe_ref[...] = pe.astype(pe_ref.dtype)


def match_head_kernel(md_ref, mf_ref, pe_ref, wp1_ref, wp2_ref, wmf_ref, w2_ref,
                      bias_ref, out_ref):
    """Per-match gather (stacked one-hot matmul) + fc_match head for one match tile."""
    mm = lambda a, b: jnp.dot(a, b, preferred_element_type=f32)
    cast = lambda v: v.astype(bf16)

    tmm = md_ref.shape[0]
    n = pe_ref.shape[0]
    cdim = wp1_ref.shape[1]
    bm1 = bias_ref[0:1, :cdim]
    bm2 = bias_ref[1:2, :1]

    md = md_ref[...]                                                   # (tmm, 2) i32
    idx = jnp.concatenate([md[:, 0:1], md[:, 1:2]], axis=0)            # (2*tmm, 1)
    sel = (lax.broadcasted_iota(jnp.int32, (2 * tmm, n), 1) == idx).astype(bf16)
    p = mm(sel, pe_ref[...])                                           # (2*tmm, C) f32
    p1, p2 = p[:tmm, :], p[tmm:, :]                                    # sublane halves

    # fc_match: Linear -> ReLU -> (Dropout=id) -> Linear -> Sigmoid; the first
    # weight is split by input block so concat([p1, p2, mf]) never materializes.
    h_m = (mm(cast(p1), wp1_ref[...]) + mm(cast(p2), wp2_ref[...])
           + mm(mf_ref[...], wmf_ref[...]) + bm1)
    h_m = jnp.maximum(h_m, 0.0)
    prob = jax.nn.sigmoid(mm(cast(h_m), w2_ref[...]) + bm2)            # (tmm, 1)

    # Lane-dense store: broadcast across 128 lanes; wrapper slices column 0.
    out_ref[...] = jnp.broadcast_to(prob, out_ref.shape)


# ------------------------------------------------------- parameter prep ------

def init_params(key, feature_dim, hidden_dim, lstm_dim, combined_dim, match_feat_dim):
    """PyTorch-equivalent parameters, stored pre-transposed to (in, out)."""
    ks = iter(jax.random.split(key, 24))
    u = lambda shape, s=0.2: jax.random.uniform(next(ks), shape, f32, -s, s)
    return {
        # SAGEConv 1 / 2 (lin_l has bias, lin_r has none).
        "wl1": u((feature_dim, hidden_dim)), "bl1": u((1, hidden_dim)),
        "wr1": u((feature_dim, hidden_dim)),
        "wl2": u((hidden_dim, hidden_dim)), "bl2": u((1, hidden_dim)),
        "wr2": u((hidden_dim, hidden_dim)),
        # LSTM, gates concatenated along the output axis in order (i, f, g, o).
        "wih": u((feature_dim, 4 * lstm_dim)), "whh": u((lstm_dim, 4 * lstm_dim)),
        "bih": u((1, 4 * lstm_dim)), "bhh": u((1, 4 * lstm_dim)),
        # lstm_proj
        "wproj": u((lstm_dim, hidden_dim)), "bproj": u((1, hidden_dim)),
        # att_layer (2*hidden -> 2): rows split into the x_gnn half / lstm_proj half.
        "watt_g": u((hidden_dim, 2)), "watt_l": u((hidden_dim, 2)), "batt": u((1, 2)),
        # fc_player
        "wfcp": u((hidden_dim, combined_dim)), "bfcp": u((1, combined_dim)),
        # fc_match
        "wm1": u((2 * combined_dim + match_feat_dim, combined_dim)),
        "bm1": u((1, combined_dim)),
        "wm2": u((combined_dim, 1)), "bm2": u((1, 1)),
    }


def _pack_biases(biases):
    """Pack small (1, X) f32 biases as rows of one (rows, 128k) array."""
    w = max(int(b.shape[-1]) for b in biases)
    w = ((w + 127) // 128) * 128
    rows = [jnp.pad(b.reshape(1, -1).astype(f32), ((0, 0), (0, w - b.shape[-1])))
            for b in biases]
    return jnp.concatenate(rows, axis=0)


def prepare_fused_params(p):
    """One-time host-side weight prep: bf16 weights, folded biases/attention."""
    combined = p["wfcp"].shape[1]
    wattd_l = p["watt_l"][:, 0:1] - p["watt_l"][:, 1:2]      # lstm-side (logit0-logit1)
    wattd_g = p["watt_g"][:, 0:1] - p["watt_g"][:, 1:2]      # gnn-side
    battd = p["batt"][:, 0:1] - p["batt"][:, 1:2]
    # Fold the lstm-side logit into lstm_proj as one extra output column.
    wproj_ext = jnp.concatenate([p["wproj"], p["wproj"] @ wattd_l], axis=1)
    bproj_ext = jnp.concatenate([p["bproj"], p["bproj"] @ wattd_l + battd], axis=1)
    return {
        "wl1": p["wl1"].astype(bf16), "wr1": p["wr1"].astype(bf16),
        "b1": p["bl1"].astype(f32),
        "wl2": p["wl2"].astype(bf16), "wr2": p["wr2"].astype(bf16),
        "wih": p["wih"].astype(bf16), "whh": p["whh"].astype(bf16),
        "wproj_ext": wproj_ext.astype(bf16),
        "wattd_g": wattd_g.astype(bf16),
        "wfcp": p["wfcp"].astype(bf16),
        "bias_b": _pack_biases([p["bl2"], p["bih"] + p["bhh"], bproj_ext, p["bfcp"]]),
        "wm1_p1": p["wm1"][:combined].astype(bf16),
        "wm1_p2": p["wm1"][combined:2 * combined].astype(bf16),
        "wm1_mf": p["wm1"][2 * combined:].astype(bf16),
        "wm2": p["wm2"].astype(bf16),
        "bias_c": _pack_biases([p["bm1"], p["bm2"]]),
    }


def build_mean_adj(edge_index, n):
    """Row-normalized adjacency: A[dst, src] = 1/deg(dst) (PyG mean aggregation)."""
    if edge_index.shape[1] == 0:
        return jnp.zeros((n, n), f32)
    src, dst = edge_index[0], edge_index[1]
    a = jnp.zeros((n, n), f32).at[dst, src].add(1.0)
    deg = jnp.sum(a, axis=1, keepdims=True)
    return a / jnp.maximum(deg, 1.0)


# ---------------------------------------------------------------- model ------

@functools.partial(jax.jit, static_argnames=("row_tile", "match_tile"))
def tennis_forward(params, x, edge_index, hist_padded, match_data, match_features,
                   row_tile=8, match_tile=8):
    """
    x             : (N, F)  player static features
    edge_index    : (2, E)  int32
    hist_padded   : (N, T, F) zero-padded per-player history (pad_sequence)
    match_data    : (M, 2)  int32 player indices
    match_features: (M, match_feat_dim)
    returns (M, 1) win probabilities
    """
    n, feat = x.shape
    t_hist = hist_padded.shape[1]
    m = match_data.shape[0]
    assert (row_tile == n) or (row_tile % 8 == 0 and n % row_tile == 0)
    assert match_tile % 8 == 0

    fp = prepare_fused_params(params)
    hidden = fp["wl1"].shape[1]
    lstm_dim = fp["whh"].shape[0]
    combined = fp["wfcp"].shape[1]
    mf_dim = match_features.shape[1]
    bias_b_w = fp["bias_b"].shape[1]
    bias_c_w = fp["bias_c"].shape[1]

    a_norm = build_mean_adj(edge_index, n).astype(bf16)
    x_bf = x.astype(bf16)
    hist_tnf = jnp.transpose(hist_padded, (1, 0, 2)).astype(bf16)   # (T, N, F)
    mf_bf = match_features.astype(bf16)

    # Pad the match count to a multiple of the match tile (index 0 is always valid).
    mpad = ((m + match_tile - 1) // match_tile) * match_tile
    if mpad != m:
        match_data = jnp.pad(match_data, ((0, mpad - m), (0, 0)))
        mf_bf = jnp.pad(mf_bf, ((0, mpad - m), (0, 0)))

    n_tiles = n // row_tile

    # ---- stage 1: SAGEConv layer 1 (A streamed per row tile) ----------------
    h1 = pl.pallas_call(
        sage1_kernel,
        grid=(n_tiles,),
        in_specs=[
            pl.BlockSpec((row_tile, n), lambda i: (i, 0)),      # A row block (streamed)
            pl.BlockSpec((n, feat), lambda i: (0, 0)),          # x (resident)
            pl.BlockSpec((feat, hidden), lambda i: (0, 0)),
            pl.BlockSpec((feat, hidden), lambda i: (0, 0)),
            pl.BlockSpec((1, hidden), lambda i: (0, 0)),
        ],
        out_specs=pl.BlockSpec((row_tile, hidden), lambda i: (i, 0)),
        out_shape=jax.ShapeDtypeStruct((n, hidden), bf16),
        compiler_params=MOSAIC_PARAMS,
    )(a_norm, x_bf, fp["wl1"], fp["wr1"], fp["b1"])

    # ---- stage 2: SAGEConv layer 2 + LSTM + attention fusion + fc_player ----
    player_emb = pl.pallas_call(
        player_emb_kernel,
        grid=(n_tiles,),
        in_specs=[
            pl.BlockSpec((row_tile, n), lambda i: (i, 0)),              # A row block
            pl.BlockSpec((n, hidden), lambda i: (0, 0)),                # h1 (resident)
            pl.BlockSpec((t_hist, row_tile, feat), lambda i: (0, i, 0)),  # history
            pl.BlockSpec((hidden, hidden), lambda i: (0, 0)),           # wl2
            pl.BlockSpec((hidden, hidden), lambda i: (0, 0)),           # wr2
            pl.BlockSpec((feat, 4 * lstm_dim), lambda i: (0, 0)),       # wih
            pl.BlockSpec((lstm_dim, 4 * lstm_dim), lambda i: (0, 0)),   # whh
            pl.BlockSpec((lstm_dim, hidden + 1), lambda i: (0, 0)),     # wproj_ext
            pl.BlockSpec((hidden, 1), lambda i: (0, 0)),                # wattd_g
            pl.BlockSpec((hidden, combined), lambda i: (0, 0)),         # wfcp
            pl.BlockSpec((4, bias_b_w), lambda i: (0, 0)),              # packed biases
        ],
        out_specs=pl.BlockSpec((row_tile, combined), lambda i: (i, 0)),
        out_shape=jax.ShapeDtypeStruct((n, combined), bf16),
        compiler_params=MOSAIC_PARAMS,
    )(a_norm, h1, hist_tnf, fp["wl2"], fp["wr2"], fp["wih"], fp["whh"],
      fp["wproj_ext"], fp["wattd_g"], fp["wfcp"], fp["bias_b"])

    # ---- stage 3: per-match gather + fc_match head ---------------------------
    out_slab = pl.pallas_call(
        match_head_kernel,
        grid=(mpad // match_tile,),
        in_specs=[
            pl.BlockSpec((match_tile, 2), lambda i: (i, 0)),            # match indices
            pl.BlockSpec((match_tile, mf_dim), lambda i: (i, 0)),       # match features
            pl.BlockSpec((n, combined), lambda i: (0, 0)),              # player_emb
            pl.BlockSpec((combined, combined), lambda i: (0, 0)),       # wm1 (p1 rows)
            pl.BlockSpec((combined, combined), lambda i: (0, 0)),       # wm1 (p2 rows)
            pl.BlockSpec((mf_dim, combined), lambda i: (0, 0)),         # wm1 (mf rows)
            pl.BlockSpec((combined, 1), lambda i: (0, 0)),              # wm2
            pl.BlockSpec((2, bias_c_w), lambda i: (0, 0)),              # packed biases
        ],
        out_specs=pl.BlockSpec((match_tile, 128), lambda i: (i, 0)),
        out_shape=jax.ShapeDtypeStruct((mpad, 128), f32),               # lane-dense slab
        compiler_params=MOSAIC_PARAMS,
    )(match_data, mf_bf, player_emb, fp["wm1_p1"], fp["wm1_p2"], fp["wm1_mf"],
      fp["wm2"], fp["bias_c"])

    return out_slab[:m, :1]


# ----------------------------------------------------- pure-JAX reference ----

def reference_forward(p, x, edge_index, hist_padded, match_data, match_features):
    """f32 reference mirroring the eval-mode PyTorch module."""
    n = x.shape[0]
    a = build_mean_adj(edge_index, n)
    h1 = jax.nn.relu(a @ x @ p["wl1"] + x @ p["wr1"] + p["bl1"])
    x_gnn = jax.nn.relu(a @ h1 @ p["wl2"] + h1 @ p["wr2"] + p["bl2"])
    ldim = p["whh"].shape[0]
    h = jnp.zeros((n, ldim), f32)
    c = jnp.zeros((n, ldim), f32)
    for t in range(hist_padded.shape[1]):
        g = hist_padded[:, t, :] @ p["wih"] + p["bih"] + h @ p["whh"] + p["bhh"]
        i_g = jax.nn.sigmoid(g[:, :ldim]); f_g = jax.nn.sigmoid(g[:, ldim:2 * ldim])
        g_g = jnp.tanh(g[:, 2 * ldim:3 * ldim]); o_g = jax.nn.sigmoid(g[:, 3 * ldim:])
        c = f_g * c + i_g * g_g
        h = o_g * jnp.tanh(c)
    lstm_proj = h @ p["wproj"] + p["bproj"]
    logits = (jnp.concatenate([x_gnn, lstm_proj], axis=1)
              @ jnp.concatenate([p["watt_g"], p["watt_l"]], axis=0) + p["batt"])
    att = jax.nn.softmax(logits, axis=1)
    fused = att[:, 0:1] * x_gnn + att[:, 1:2] * lstm_proj
    pe = fused @ p["wfcp"] + p["bfcp"]
    mi = jnp.concatenate([pe[match_data[:, 0]], pe[match_data[:, 1]],
                          match_features], axis=1)
    hm = jax.nn.relu(mi @ p["wm1"] + p["bm1"])
    return jax.nn.sigmoid(hm @ p["wm2"] + p["bm2"])


# ------------------------------------------------------------------ main -----

if __name__ == "__main__":
    N_PLAYERS = 16
    FEATURE_DIM = 4
    HIDDEN_DIM = 32
    LSTM_DIM = 16
    COMBINED_DIM = 16
    MATCH_FEAT_DIM = 36
    T_HIST = 6
    N_MATCHES = 5          # not a multiple of 8 on purpose (exercises padding)
    ROW_TILE = 8           # grid = (2,) row tiles
    MATCH_TILE = 8

    key = jax.random.PRNGKey(0)
    k_param, k_x, k_hist, k_mf = jax.random.split(key, 4)

    params = init_params(k_param, FEATURE_DIM, HIDDEN_DIM, LSTM_DIM,
                         COMBINED_DIM, MATCH_FEAT_DIM)

    x = jax.random.normal(k_x, (N_PLAYERS, FEATURE_DIM), f32)

    edges = [(0, 1), (1, 0), (1, 2), (2, 3), (3, 2), (4, 5), (5, 6), (6, 7),
             (7, 4), (2, 5), (8, 9), (9, 8), (10, 11), (11, 12), (12, 13),
             (13, 10), (14, 15), (15, 14), (3, 9), (6, 12)]
    edge_index = jnp.asarray(edges, dtype=jnp.int32).T                  # (2, E)

    # pad_sequence(player_history) equivalent: zero-padded (N, T, F) histories.
    hist_padded = jax.random.normal(k_hist, (N_PLAYERS, T_HIST, FEATURE_DIM), f32)

    match_data = jnp.asarray([[0, 1], [2, 3], [4, 5], [6, 7], [8, 15]],
                             dtype=jnp.int32)
    match_features = jax.random.normal(k_mf, (N_MATCHES, MATCH_FEAT_DIM), f32)

    out = tennis_forward(params, x, edge_index, hist_padded, match_data,
                         match_features, row_tile=ROW_TILE, match_tile=MATCH_TILE)
    out = jax.block_until_ready(out)

    assert out.shape == (N_MATCHES, 1)
    assert bool(jnp.all(jnp.isfinite(out)))
    assert bool(jnp.all((out >= 0.0) & (out <= 1.0)))

    ref = reference_forward(params, x, edge_index, hist_padded, match_data,
                            match_features)
    assert bool(jnp.max(jnp.abs(out - ref)) < 5e-2)   # bf16-matmul tolerance
    print("KERNEL_OK")
</pallas_src>

<mosaic_0001>
module attributes {stable_mosaic.version = 11 : i64} {
  func.func @sage1_kernel(%arg0: i32, %arg1: memref<8x16xbf16, #tpu.memory_space<vmem>>, %arg2: memref<16x4xbf16, #tpu.memory_space<vmem>>, %arg3: memref<4x32xbf16, #tpu.memory_space<vmem>>, %arg4: memref<4x32xbf16, #tpu.memory_space<vmem>>, %arg5: memref<1x32xf32, #tpu.memory_space<vmem>>, %arg6: memref<8x32xbf16, #tpu.memory_space<vmem>>) attributes {dimension_semantics = [#tpu.dimension_semantics<parallel>], iteration_bounds = array<i64: 2>, scalar_prefetch = 0 : i64, scratch_operands = 0 : i64, tpu.core_type = #tpu.core_type<tc>, window_params = [{transform_indices = @transform_0, window_bounds = array<i64: 8, 16>}, {pipeline_mode = #tpu.pipeline_mode<synchronous>, transform_indices = @transform_1, window_bounds = array<i64: 16, 4>}, {pipeline_mode = #tpu.pipeline_mode<synchronous>, transform_indices = @transform_2, window_bounds = array<i64: 4, 32>}, {pipeline_mode = #tpu.pipeline_mode<synchronous>, transform_indices = @transform_3, window_bounds = array<i64: 4, 32>}, {pipeline_mode = #tpu.pipeline_mode<synchronous>, transform_indices = @transform_4, window_bounds = array<i64: 1, 32>}, {transform_indices = @transform_5, window_bounds = array<i64: 8, 32>}]} {
    %c8_i32 = arith.constant 8 : i32
    %0 = arith.muli %arg0, %c8_i32 : i32
    %1 = tpu.assume_multiple %0, 8 : i32
    %c0 = arith.constant 0 : index
    %c0_0 = arith.constant 0 : index
    %2 = vector.load %arg1[%c0, %c0_0] : memref<8x16xbf16, #tpu.memory_space<vmem>>, vector<8x16xbf16>
    %c0_1 = arith.constant 0 : index
    %c0_2 = arith.constant 0 : index
    %3 = vector.load %arg2[%c0_1, %c0_2] : memref<16x4xbf16, #tpu.memory_space<vmem>>, vector<16x4xbf16>
    %cst = arith.constant dense<0.000000e+00> : vector<8x4xf32>
    %4 = tpu.matmul %2, %3, %cst {dimension_numbers = #tpu.dot_dimension_numbers<[1], [0], [0], [1], [0, 0, 1, 1], [], []>} : vector<8x16xbf16>, vector<16x4xbf16>, vector<8x4xf32> -> vector<8x4xf32>
    %5 = arith.index_cast %1 : i32 to index
    %c0_3 = arith.constant 0 : index
    %6 = vector.load %arg2[%5, %c0_3] : memref<16x4xbf16, #tpu.memory_space<vmem>>, vector<8x4xbf16>
    %7 = arith.truncf %4 : vector<8x4xf32> to vector<8x4xbf16>
    %c0_4 = arith.constant 0 : index
    %c0_5 = arith.constant 0 : index
    %8 = vector.load %arg3[%c0_4, %c0_5] : memref<4x32xbf16, #tpu.memory_space<vmem>>, vector<4x32xbf16>
    %cst_6 = arith.constant dense<0.000000e+00> : vector<8x32xf32>
    %9 = tpu.matmul %7, %8, %cst_6 {dimension_numbers = #tpu.dot_dimension_numbers<[1], [0], [0], [1], [0, 0, 1, 1], [], []>} : vector<8x4xbf16>, vector<4x32xbf16>, vector<8x32xf32> -> vector<8x32xf32>
    %c0_7 = arith.constant 0 : index
    %c0_8 = arith.constant 0 : index
    %10 = vector.load %arg4[%c0_7, %c0_8] : memref<4x32xbf16, #tpu.memory_space<vmem>>, vector<4x32xbf16>
    %cst_9 = arith.constant dense<0.000000e+00> : vector<8x32xf32>
    %11 = tpu.matmul %6, %10, %cst_9 {dimension_numbers = #tpu.dot_dimension_numbers<[1], [0], [0], [1], [0, 0, 1, 1], [], []>} : vector<8x4xbf16>, vector<4x32xbf16>, vector<8x32xf32> -> vector<8x32xf32>
    %12 = arith.addf %9, %11 : vector<8x32xf32>
    %c0_10 = arith.constant 0 : index
    %c0_11 = arith.constant 0 : index
    %13 = vector.load %arg5[%c0_10, %c0_11] : memref<1x32xf32, #tpu.memory_space<vmem>>, vector<1x32xf32>
    %14 = vector.broadcast %13 : vector<1x32xf32> to vector<8x32xf32>
    %15 = arith.addf %12, %14 : vector<8x32xf32>
    %cst_12 = arith.constant 0.000000e+00 : f32
    %16 = vector.broadcast %cst_12 : f32 to vector<8x32xf32>
    %17 = arith.maximumf %15, %16 : vector<8x32xf32>
    %18 = arith.truncf %17 : vector<8x32xf32> to vector<8x32xbf16>
    %c0_13 = arith.constant 0 : index
    %c0_14 = arith.constant 0 : index
    %19 = vector.load %arg6[%c0_13, %c0_14] : memref<8x32xbf16, #tpu.memory_space<vmem>>, vector<8x32xbf16>
    tpu.vector_store %arg6[%c0_13, %c0_14], %18 {strides = array<i32>} : memref<8x32xbf16, #tpu.memory_space<vmem>>, vector<8x32xbf16>,
    return
  }
  func.func @transform_0(%arg0: i32) -> (i32, i32) {
    %c0_i32 = arith.constant 0 : i32
    %c0_i32_0 = arith.constant 0 : i32
    return %arg0, %c0_i32 : i32, i32
  }
  func.func @transform_1(%arg0: i32) -> (i32, i32) {
    %c0_i32 = arith.constant 0 : i32
    %c0_i32_0 = arith.constant 0 : i32
    %c0_i32_1 = arith.constant 0 : i32
    return %c0_i32, %c0_i32_0 : i32, i32
  }
  func.func @transform_2(%arg0: i32) -> (i32, i32) {
    %c0_i32 = arith.constant 0 : i32
    %c0_i32_0 = arith.constant 0 : i32
    %c0_i32_1 = arith.constant 0 : i32
    return %c0_i32, %c0_i32_0 : i32, i32
  }
  func.func @transform_3(%arg0: i32) -> (i32, i32) {
    %c0_i32 = arith.constant 0 : i32
    %c0_i32_0 = arith.constant 0 : i32
    %c0_i32_1 = arith.constant 0 : i32
    return %c0_i32, %c0_i32_0 : i32, i32
  }
  func.func @transform_4(%arg0: i32) -> (i32, i32) {
    %c0_i32 = arith.constant 0 : i32
    %c0_i32_0 = arith.constant 0 : i32
    %c0_i32_1 = arith.constant 0 : i32
    return %c0_i32, %c0_i32_0 : i32, i32
  }
  func.func @transform_5(%arg0: i32) -> (i32, i32) {
    %c0_i32 = arith.constant 0 : i32
    %c0_i32_0 = arith.constant 0 : i32
    return %arg0, %c0_i32 : i32, i32
  }
}

module attributes {stable_mosaic.version = 11 : i64} {
  func.func @player_emb_kernel(%arg0: i32, %arg1: memref<8x16xbf16, #tpu.memory_space<vmem>>, %arg2: memref<16x32xbf16, #tpu.memory_space<vmem>>, %arg3: memref<6x8x4xbf16, #tpu.memory_space<vmem>>, %arg4: memref<32x32xbf16, #tpu.memory_space<vmem>>, %arg5: memref<32x32xbf16, #tpu.memory_space<vmem>>, %arg6: memref<4x64xbf16, #tpu.memory_space<vmem>>, %arg7: memref<16x64xbf16, #tpu.memory_space<vmem>>, %arg8: memref<16x33xbf16, #tpu.memory_space<vmem>>, %arg9: memref<32x1xbf16, #tpu.memory_space<vmem>>, %arg10: memref<32x16xbf16, #tpu.memory_space<vmem>>, %arg11: memref<4x128xf32, #tpu.memory_space<vmem>>, %arg12: memref<8x16xbf16, #tpu.memory_space<vmem>>) attributes {dimension_semantics = [#tpu.dimension_semantics<parallel>], iteration_bounds = array<i64: 2>, scalar_prefetch = 0 : i64, scratch_operands = 0 : i64, tpu.core_type = #tpu.core_type<tc>, window_params = [{transform_indices = @transform_0, window_bounds = array<i64: 8, 16>}, {pipeline_mode = #tpu.pipeline_mode<synchronous>, transform_indices = @transform_1, window_bounds = array<i64: 16, 32>}, {transform_indices = @transform_2, window_bounds = array<i64: 6, 8, 4>}, {pipeline_mode = #tpu.pipeline_mode<synchronous>, transform_indices = @transform_3, window_bounds = array<i64: 32, 32>}, {pipeline_mode = #tpu.pipeline_mode<synchronous>, transform_indices = @transform_4, window_bounds = array<i64: 32, 32>}, {pipeline_mode = #tpu.pipeline_mode<synchronous>, transform_indices = @transform_5, window_bounds = array<i64: 4, 64>}, {pipeline_mode = #tpu.pipeline_mode<synchronous>, transform_indices = @transform_6, window_bounds = array<i64: 16, 64>}, {pipeline_mode = #tpu.pipeline_mode<synchronous>, transform_indices = @transform_7, window_bounds = array<i64: 16, 33>}, {pipeline_mode = #tpu.pipeline_mode<synchronous>, transform_indices = @transform_8, window_bounds = array<i64: 32, 1>}, {pipeline_mode = #tpu.pipeline_mode<synchronous>, transform_indices = @transform_9, window_bounds = array<i64: 32, 16>}, {pipeline_mode = #tpu.pipeline_mode<synchronous>, transform_indices = @transform_10, window_bounds = array<i64: 4, 128>}, {transform_indices = @transform_11, window_bounds = array<i64: 8, 16>}]} {
    %c8_i32 = arith.constant 8 : i32
    %0 = arith.muli %arg0, %c8_i32 : i32
    %1 = tpu.assume_multiple %0, 8 : i32
    %c0 = arith.constant 0 : index
    %c0_0 = arith.constant 0 : index
    %2 = vector.load %arg11[%c0, %c0_0] : memref<4x128xf32, #tpu.memory_space<vmem>>, vector<1x32xf32>
    %c1 = arith.constant 1 : index
    %c0_1 = arith.constant 0 : index
    %3 = vector.load %arg11[%c1, %c0_1] : memref<4x128xf32, #tpu.memory_space<vmem>>, vector<1x64xf32>
    %c2 = arith.constant 2 : index
    %c0_2 = arith.constant 0 : index
    %4 = vector.load %arg11[%c2, %c0_2] : memref<4x128xf32, #tpu.memory_space<vmem>>, vector<1x33xf32>
    %c3 = arith.constant 3 : index
    %c0_3 = arith.constant 0 : index
    %5 = vector.load %arg11[%c3, %c0_3] : memref<4x128xf32, #tpu.memory_space<vmem>>, vector<1x16xf32>
    %c0_4 = arith.constant 0 : index
    %c0_5 = arith.constant 0 : index
    %6 = vector.load %arg2[%c0_4, %c0_5] : memref<16x32xbf16, #tpu.memory_space<vmem>>, vector<16x32xbf16>
    %7 = arith.index_cast %1 : i32 to index
    %c0_6 = arith.constant 0 : index
    %8 = vector.load %arg2[%7, %c0_6] : memref<16x32xbf16, #tpu.memory_space<vmem>>, vector<8x32xbf16>
    %c0_7 = arith.constant 0 : index
    %c0_8 = arith.constant 0 : index
    %9 = vector.load %arg1[%c0_7, %c0_8] : memref<8x16xbf16, #tpu.memory_space<vmem>>, vector<8x16xbf16>
    %cst = arith.constant dense<0.000000e+00> : vector<8x32xf32>
    %10 = tpu.matmul %9, %6, %cst {dimension_numbers = #tpu.dot_dimension_numbers<[1], [0], [0], [1], [0, 0, 1, 1], [], []>} : vector<8x16xbf16>, vector<16x32xbf16>, vector<8x32xf32> -> vector<8x32xf32>
    %11 = arith.truncf %10 : vector<8x32xf32> to vector<8x32xbf16>
    %c0_9 = arith.constant 0 : index
    %c0_10 = arith.constant 0 : index
    %12 = vector.load %arg4[%c0_9, %c0_10] : memref<32x32xbf16, #tpu.memory_space<vmem>>, vector<32x32xbf16>
    %cst_11 = arith.constant dense<0.000000e+00> : vector<8x32xf32>
    %13 = tpu.matmul %11, %12, %cst_11 {dimension_numbers = #tpu.dot_dimension_numbers<[1], [0], [0], [1], [0, 0, 1, 1], [], []>} : vector<8x32xbf16>, vector<32x32xbf16>, vector<8x32xf32> -> vector<8x32xf32>
    %c0_12 = arith.constant 0 : index
    %c0_13 = arith.constant 0 : index
    %14 = vector.load %arg5[%c0_12, %c0_13] : memref<32x32xbf16, #tpu.memory_space<vmem>>, vector<32x32xbf16>
    %cst_14 = arith.constant dense<0.000000e+00> : vector<8x32xf32>
    %15 = tpu.matmul %8, %14, %cst_14 {dimension_numbers = #tpu.dot_dimension_numbers<[1], [0], [0], [1], [0, 0, 1, 1], [], []>} : vector<8x32xbf16>, vector<32x32xbf16>, vector<8x32xf32> -> vector<8x32xf32>
    %16 = arith.addf %13, %15 : vector<8x32xf32>
    %17 = vector.broadcast %2 : vector<1x32xf32> to vector<8x32xf32>
    %18 = arith.addf %16, %17 : vector<8x32xf32>
    %cst_15 = arith.constant 0.000000e+00 : f32
    %19 = vector.broadcast %cst_15 : f32 to vector<8x32xf32>
    %20 = arith.maximumf %18, %19 : vector<8x32xf32>
    %c0_16 = arith.constant 0 : index
    %c0_17 = arith.constant 0 : index
    %c0_18 = arith.constant 0 : index
    %21 = vector.load %arg3[%c0_16, %c0_17, %c0_18] : memref<6x8x4xbf16, #tpu.memory_space<vmem>>, vector<6x8x4xbf16>
    %22 = vector.shape_cast %21 : vector<6x8x4xbf16> to vector<48x4xbf16>
    %c0_19 = arith.constant 0 : index
    %c0_20 = arith.constant 0 : index
    %23 = vector.load %arg6[%c0_19, %c0_20] : memref<4x64xbf16, #tpu.memory_space<vmem>>, vector<4x64xbf16>
    %cst_21 = arith.constant dense<0.000000e+00> : vector<48x64xf32>
    %24 = tpu.matmul %22, %23, %cst_21 {dimension_numbers = #tpu.dot_dimension_numbers<[1], [0], [0], [1], [0, 0, 1, 1], [], []>} : vector<48x4xbf16>, vector<4x64xbf16>, vector<48x64xf32> -> vector<48x64xf32>
    %25 = vector.broadcast %3 : vector<1x64xf32> to vector<48x64xf32>
    %26 = arith.addf %24, %25 : vector<48x64xf32>
    %c0_22 = arith.constant 0 : index
    %c0_23 = arith.constant 0 : index
    %27 = vector.load %arg7[%c0_22, %c0_23] : memref<16x64xbf16, #tpu.memory_space<vmem>>, vector<16x64xbf16>
    %cst_24 = arith.constant 0.000000e+00 : f32
    %28 = vector.broadcast %cst_24 : f32 to vector<8x16xf32>
    %cst_25 = arith.constant 0.000000e+00 : f32
    %29 = vector.broadcast %cst_25 : f32 to vector<8x16xf32>
    %30 = vector.extract_strided_slice %26 {offsets = [0, 0], sizes = [8, 64], strides = [1, 1]} : vector<48x64xf32> to vector<8x64xf32>
    %31 = arith.truncf %28 : vector<8x16xf32> to vector<8x16xbf16>
    %cst_26 = arith.constant dense<0.000000e+00> : vector<8x64xf32>
    %32 = tpu.matmul %31, %27, %cst_26 {dimension_numbers = #tpu.dot_dimension_numbers<[1], [0], [0], [1], [0, 0, 1, 1], [], []>} : vector<8x16xbf16>, vector<16x64xbf16>, vector<8x64xf32> -> vector<8x64xf32>
    %33 = arith.addf %30, %32 : vector<8x64xf32>
    %34 = vector.extract_strided_slice %33 {offsets = [0, 0], sizes = [8, 16], strides = [1, 1]} : vector<8x64xf32> to vector<8x16xf32>
    %35 = arith.negf %34 : vector<8x16xf32>
    %36 = math.exp %35 : vector<8x16xf32>
    %cst_27 = arith.constant 1.000000e+00 : f32
    %37 = vector.broadcast %cst_27 : f32 to vector<8x16xf32>
    %38 = arith.addf %37, %36 : vector<8x16xf32>
    %39 = arith.divf %37, %38 : vector<8x16xf32>
    %40 = vector.extract_strided_slice %33 {offsets = [0, 16], sizes = [8, 16], strides = [1, 1]} : vector<8x64xf32> to vector<8x16xf32>
    %41 = arith.negf %40 : vector<8x16xf32>
    %42 = math.exp %41 : vector<8x16xf32>
    %cst_28 = arith.constant 1.000000e+00 : f32
    %43 = vector.broadcast %cst_28 : f32 to vector<8x16xf32>
    %44 = arith.addf %43, %42 : vector<8x16xf32>
    %45 = arith.divf %43, %44 : vector<8x16xf32>
    %46 = vector.extract_strided_slice %33 {offsets = [0, 32], sizes = [8, 16], strides = [1, 1]} : vector<8x64xf32> to vector<8x16xf32>
    %47 = math.tanh %46 : vector<8x16xf32>
    %48 = vector.extract_strided_slice %33 {offsets = [0, 48], sizes = [8, 16], strides = [1, 1]} : vector<8x64xf32> to vector<8x16xf32>
    %49 = arith.negf %48 : vector<8x16xf32>
    %50 = math.exp %49 : vector<8x16xf32>
    %cst_29 = arith.constant 1.000000e+00 : f32
    %51 = vector.broadcast %cst_29 : f32 to vector<8x16xf32>
    %52 = arith.addf %51, %50 : vector<8x16xf32>
    %53 = arith.divf %51, %52 : vector<8x16xf32>
    %54 = arith.mulf %45, %29 : vector<8x16xf32>
    %55 = arith.mulf %39, %47 : vector<8x16xf32>
    %56 = arith.addf %54, %55 : vector<8x16xf32>
    %57 = math.tanh %56 : vector<8x16xf32>
    %58 = arith.mulf %53, %57 : vector<8x16xf32>
    %59 = vector.extract_strided_slice %26 {offsets = [8, 0], sizes = [8, 64], strides = [1, 1]} : vector<48x64xf32> to vector<8x64xf32>
    %60 = arith.truncf %58 : vector<8x16xf32> to vector<8x16xbf16>
    %cst_30 = arith.constant dense<0.000000e+00> : vector<8x64xf32>
    %61 = tpu.matmul %60, %27, %cst_30 {dimension_numbers = #tpu.dot_dimension_numbers<[1], [0], [0], [1], [0, 0, 1, 1], [], []>} : vector<8x16xbf16>, vector<16x64xbf16>, vector<8x64xf32> -> vector<8x64xf32>
    %62 = arith.addf %59, %61 : vector<8x64xf32>
    %63 = vector.extract_strided_slice %62 {offsets = [0, 0], sizes = [8, 16], strides = [1, 1]} : vector<8x64xf32> to vector<8x16xf32>
    %64 = arith.negf %63 : vector<8x16xf32>
    %65 = math.exp %64 : vector<8x16xf32>
    %cst_31 = arith.constant 1.000000e+00 : f32
    %66 = vector.broadcast %cst_31 : f32 to vector<8x16xf32>
    %67 = arith.addf %66, %65 : vector<8x16xf32>
    %68 = arith.divf %66, %67 : vector<8x16xf32>
    %69 = vector.extract_strided_slice %62 {offsets = [0, 16], sizes = [8, 16], strides = [1, 1]} : vector<8x64xf32> to vector<8x16xf32>
    %70 = arith.negf %69 : vector<8x16xf32>
    %71 = math.exp %70 : vector<8x16xf32>
    %cst_32 = arith.constant 1.000000e+00 : f32
    %72 = vector.broadcast %cst_32 : f32 to vector<8x16xf32>
    %73 = arith.addf %72, %71 : vector<8x16xf32>
    %74 = arith.divf %72, %73 : vector<8x16xf32>
    %75 = vector.extract_strided_slice %62 {offsets = [0, 32], sizes = [8, 16], strides = [1, 1]} : vector<8x64xf32> to vector<8x16xf32>
    %76 = math.tanh %75 : vector<8x16xf32>
    %77 = vector.extract_strided_slice %62 {offsets = [0, 48], sizes = [8, 16], strides = [1, 1]} : vector<8x64xf32> to vector<8x16xf32>
    %78 = arith.negf %77 : vector<8x16xf32>
    %79 = math.exp %78 : vector<8x16xf32>
    %cst_33 = arith.constant 1.000000e+00 : f32
    %80 = vector.broadcast %cst_33 : f32 to vector<8x16xf32>
    %81 = arith.addf %80, %79 : vector<8x16xf32>
    %82 = arith.divf %80, %81 : vector<8x16xf32>
    %83 = arith.mulf %74, %56 : vector<8x16xf32>
    %84 = arith.mulf %68, %76 : vector<8x16xf32>
    %85 = arith.addf %83, %84 : vector<8x16xf32>
    %86 = math.tanh %85 : vector<8x16xf32>
    %87 = arith.mulf %82, %86 : vector<8x16xf32>
    %88 = vector.extract_strided_slice %26 {offsets = [16, 0], sizes = [8, 64], strides = [1, 1]} : vector<48x64xf32> to vector<8x64xf32>
    %89 = arith.truncf %87 : vector<8x16xf32> to vector<8x16xbf16>
    %cst_34 = arith.constant dense<0.000000e+00> : vector<8x64xf32>
    %90 = tpu.matmul %89, %27, %cst_34 {dimension_numbers = #tpu.dot_dimension_numbers<[1], [0], [0], [1], [0, 0, 1, 1], [], []>} : vector<8x16xbf16>, vector<16x64xbf16>, vector<8x64xf32> -> vector<8x64xf32>
    %91 = arith.addf %88, %90 : vector<8x64xf32>
    %92 = vector.extract_strided_slice %91 {offsets = [0, 0], sizes = [8, 16], strides = [1, 1]} : vector<8x64xf32> to vector<8x16xf32>
    %93 = arith.negf %92 : vector<8x16xf32>
    %94 = math.exp %93 : vector<8x16xf32>
    %cst_35 = arith.constant 1.000000e+00 : f32
    %95 = vector.broadcast %cst_35 : f32 to vector<8x16xf32>
    %96 = arith.addf %95, %94 : vector<8x16xf32>
    %97 = arith.divf %95, %96 : vector<8x16xf32>
    %98 = vector.extract_strided_slice %91 {offsets = [0, 16], sizes = [8, 16], strides = [1, 1]} : vector<8x64xf32> to vector<8x16xf32>
    %99 = arith.negf %98 : vector<8x16xf32>
    %100 = math.exp %99 : vector<8x16xf32>
    %cst_36 = arith.constant 1.000000e+00 : f32
    %101 = vector.broadcast %cst_36 : f32 to vector<8x16xf32>
    %102 = arith.addf %101, %100 : vector<8x16xf32>
    %103 = arith.divf %101, %102 : vector<8x16xf32>
    %104 = vector.extract_strided_slice %91 {offsets = [0, 32], sizes = [8, 16], strides = [1, 1]} : vector<8x64xf32> to vector<8x16xf32>
    %105 = math.tanh %104 : vector<8x16xf32>
    %106 = vector.extract_strided_slice %91 {offsets = [0, 48], sizes = [8, 16], strides = [1, 1]} : vector<8x64xf32> to vector<8x16xf32>
    %107 = arith.negf %106 : vector<8x16xf32>
    %108 = math.exp %107 : vector<8x16xf32>
    %cst_37 = arith.constant 1.000000e+00 : f32
    %109 = vector.broadcast %cst_37 : f32 to vector<8x16xf32>
    %110 = arith.addf %109, %108 : vector<8x16xf32>
    %111 = arith.divf %109, %110 : vector<8x16xf32>
    %112 = arith.mulf %103, %85 : vector<8x16xf32>
    %113 = arith.mulf %97, %105 : vector<8x16xf32>
    %114 = arith.addf %112, %113 : vector<8x16xf32>
    %115 = math.tanh %114 : vector<8x16xf32>
    %116 = arith.mulf %111, %115 : vector<8x16xf32>
    %117 = vector.extract_strided_slice %26 {offsets = [24, 0], sizes = [8, 64], strides = [1, 1]} : vector<48x64xf32> to vector<8x64xf32>
    %118 = arith.truncf %116 : vector<8x16xf32> to vector<8x16xbf16>
    %cst_38 = arith.constant dense<0.000000e+00> : vector<8x64xf32>
    %119 = tpu.matmul %118, %27, %cst_38 {dimension_numbers = #tpu.dot_dimension_numbers<[1], [0], [0], [1], [0, 0, 1, 1], [], []>} : vector<8x16xbf16>, vector<16x64xbf16>, vector<8x64xf32> -> vector<8x64xf32>
    %120 = arith.addf %117, %119 : vector<8x64xf32>
    %121 = vector.extract_strided_slice %120 {offsets = [0, 0], sizes = [8, 16], strides = [1, 1]} : vector<8x64xf32> to vector<8x16xf32>
    %122 = arith.negf %121 : vector<8x16xf32>
    %123 = math.exp %122 : vector<8x16xf32>
    %cst_39 = arith.constant 1.000000e+00 : f32
    %124 = vector.broadcast %cst_39 : f32 to vector<8x16xf32>
    %125 = arith.addf %124, %123 : vector<8x16xf32>
    %126 = arith.divf %124, %125 : vector<8x16xf32>
    %127 = vector.extract_strided_slice %120 {offsets = [0, 16], sizes = [8, 16], strides = [1, 1]} : vector<8x64xf32> to vector<8x16xf32>
    %128 = arith.negf %127 : vector<8x16xf32>
    %129 = math.exp %128 : vector<8x16xf32>
    %cst_40 = arith.constant 1.000000e+00 : f32
    %130 = vector.broadcast %cst_40 : f32 to vector<8x16xf32>
    %131 = arith.addf %130, %129 : vector<8x16xf32>
    %132 = arith.divf %130, %131 : vector<8x16xf32>
    %133 = vector.extract_strided_slice %120 {offsets = [0, 32], sizes = [8, 16], strides = [1, 1]} : vector<8x64xf32> to vector<8x16xf32>
    %134 = math.tanh %133 : vector<8x16xf32>
    %135 = vector.extract_strided_slice %120 {offsets = [0, 48], sizes = [8, 16], strides = [1, 1]} : vector<8x64xf32> to vector<8x16xf32>
    %136 = arith.negf %135 : vector<8x16xf32>
    %137 = math.exp %136 : vector<8x16xf32>
    %cst_41 = arith.constant 1.000000e+00 : f32
    %138 = vector.broadcast %cst_41 : f32 to vector<8x16xf32>
    %139 = arith.addf %138, %137 : vector<8x16xf32>
    %140 = arith.divf %138, %139 : vector<8x16xf32>
    %141 = arith.mulf %132, %114 : vector<8x16xf32>
    %142 = arith.mulf %126, %134 : vector<8x16xf32>
    %143 = arith.addf %141, %142 : vector<8x16xf32>
    %144 = math.tanh %143 : vector<8x16xf32>
    %145 = arith.mulf %140, %144 : vector<8x16xf32>
    %146 = vector.extract_strided_slice %26 {offsets = [32, 0], sizes = [8, 64], strides = [1, 1]} : vector<48x64xf32> to vector<8x64xf32>
    %147 = arith.truncf %145 : vector<8x16xf32> to vector<8x16xbf16>
    %cst_42 = arith.constant dense<0.000000e+00> : vector<8x64xf32>
    %148 = tpu.matmul %147, %27, %cst_42 {dimension_numbers = #tpu.dot_dimension_numbers<[1], [0], [0], [1], [0, 0, 1, 1], [], []>} : vector<8x16xbf16>, vector<16x64xbf16>, vector<8x64xf32> -> vector<8x64xf32>
    %149 = arith.addf %146, %148 : vector<8x64xf32>
    %150 = vector.extract_strided_slice %149 {offsets = [0, 0], sizes = [8, 16], strides = [1, 1]} : vector<8x64xf32> to vector<8x16xf32>
    %151 = arith.negf %150 : vector<8x16xf32>
    %152 = math.exp %151 : vector<8x16xf32>
    %cst_43 = arith.constant 1.000000e+00 : f32
    %153 = vector.broadcast %cst_43 : f32 to vector<8x16xf32>
    %154 = arith.addf %153, %152 : vector<8x16xf32>
    %155 = arith.divf %153, %154 : vector<8x16xf32>
    %156 = vector.extract_strided_slice %149 {offsets = [0, 16], sizes = [8, 16], strides = [1, 1]} : vector<8x64xf32> to vector<8x16xf32>
    %157 = arith.negf %156 : vector<8x16xf32>
    %158 = math.exp %157 : vector<8x16xf32>
    %cst_44 = arith.constant 1.000000e+00 : f32
    %159 = vector.broadcast %cst_44 : f32 to vector<8x16xf32>
    %160 = arith.addf %159, %158 : vector<8x16xf32>
    %161 = arith.divf %159, %160 : vector<8x16xf32>
    %162 = vector.extract_strided_slice %149 {offsets = [0, 32], sizes = [8, 16], strides = [1, 1]} : vector<8x64xf32> to vector<8x16xf32>
    %163 = math.tanh %162 : vector<8x16xf32>
    %164 = vector.extract_strided_slice %149 {offsets = [0, 48], sizes = [8, 16], strides = [1, 1]} : vector<8x64xf32> to vector<8x16xf32>
    %165 = arith.negf %164 : vector<8x16xf32>
    %166 = math.exp %165 : vector<8x16xf32>
    %cst_45 = arith.constant 1.000000e+00 : f32
    %167 = vector.broadcast %cst_45 : f32 to vector<8x16xf32>
    %168 = arith.addf %167, %166 : vector<8x16xf32>
    %169 = arith.divf %167, %168 : vector<8x16xf32>
    %170 = arith.mulf %161, %143 : vector<8x16xf32>
    %171 = arith.mulf %155, %163 : vector<8x16xf32>
    %172 = arith.addf %170, %171 : vector<8x16xf32>
    %173 = math.tanh %172 : vector<8x16xf32>
    %174 = arith.mulf %169, %173 : vector<8x16xf32>
    %175 = vector.extract_strided_slice %26 {offsets = [40, 0], sizes = [8, 64], strides = [1, 1]} : vector<48x64xf32> to vector<8x64xf32>
    %176 = arith.truncf %174 : vector<8x16xf32> to vector<8x16xbf16>
    %cst_46 = arith.constant dense<0.000000e+00> : vector<8x64xf32>
    %177 = tpu.matmul %176, %27, %cst_46 {dimension_numbers = #tpu.dot_dimension_numbers<[1], [0], [0], [1], [0, 0, 1, 1], [], []>} : vector<8x16xbf16>, vector<16x64xbf16>, vector<8x64xf32> -> vector<8x64xf32>
    %178 = arith.addf %175, %177 : vector<8x64xf32>
    %179 = vector.extract_strided_slice %178 {offsets = [0, 0], sizes = [8, 16], strides = [1, 1]} : vector<8x64xf32> to vector<8x16xf32>
    %180 = arith.negf %179 : vector<8x16xf32>
    %181 = math.exp %180 : vector<8x16xf32>
    %cst_47 = arith.constant 1.000000e+00 : f32
    %182 = vector.broadcast %cst_47 : f32 to vector<8x16xf32>
    %183 = arith.addf %182, %181 : vector<8x16xf32>
    %184 = arith.divf %182, %183 : vector<8x16xf32>
    %185 = vector.extract_strided_slice %178 {offsets = [0, 16], sizes = [8, 16], strides = [1, 1]} : vector<8x64xf32> to vector<8x16xf32>
    %186 = arith.negf %185 : vector<8x16xf32>
    %187 = math.exp %186 : vector<8x16xf32>
    %cst_48 = arith.constant 1.000000e+00 : f32
    %188 = vector.broadcast %cst_48 : f32 to vector<8x16xf32>
    %189 = arith.addf %188, %187 : vector<8x16xf32>
    %190 = arith.divf %188, %189 : vector<8x16xf32>
    %191 = vector.extract_strided_slice %178 {offsets = [0, 32], sizes = [8, 16], strides = [1, 1]} : vector<8x64xf32> to vector<8x16xf32>
    %192 = math.tanh %191 : vector<8x16xf32>
    %193 = vector.extract_strided_slice %178 {offsets = [0, 48], sizes = [8, 16], strides = [1, 1]} : vector<8x64xf32> to vector<8x16xf32>
    %194 = arith.negf %193 : vector<8x16xf32>
    %195 = math.exp %194 : vector<8x16xf32>
    %cst_49 = arith.constant 1.000000e+00 : f32
    %196 = vector.broadcast %cst_49 : f32 to vector<8x16xf32>
    %197 = arith.addf %196, %195 : vector<8x16xf32>
    %198 = arith.divf %196, %197 : vector<8x16xf32>
    %199 = arith.mulf %190, %172 : vector<8x16xf32>
    %200 = arith.mulf %184, %192 : vector<8x16xf32>
    %201 = arith.addf %199, %200 : vector<8x16xf32>
    %202 = math.tanh %201 : vector<8x16xf32>
    %203 = arith.mulf %198, %202 : vector<8x16xf32>
    %204 = arith.truncf %203 : vector<8x16xf32> to vector<8x16xbf16>
    %c0_50 = arith.constant 0 : index
    %c0_51 = arith.constant 0 : index
    %205 = vector.load %arg8[%c0_50, %c0_51] : memref<16x33xbf16, #tpu.memory_space<vmem>>, vector<16x33xbf16>
    %cst_52 = arith.constant dense<0.000000e+00> : vector<8x33xf32>
    %206 = tpu.matmul %204, %205, %cst_52 {dimension_numbers = #tpu.dot_dimension_numbers<[1], [0], [0], [1], [0, 0, 1, 1], [], []>} : vector<8x16xbf16>, vector<16x33xbf16>, vector<8x33xf32> -> vector<8x33xf32>
    %207 = vector.broadcast %4 : vector<1x33xf32> to vector<8x33xf32>
    %208 = arith.addf %206, %207 : vector<8x33xf32>
    %209 = vector.extract_strided_slice %208 {offsets = [0, 0], sizes = [8, 32], strides = [1, 1]} : vector<8x33xf32> to vector<8x32xf32>
    %210 = vector.extract_strided_slice %208 {offsets = [0, 32], sizes = [8, 1], strides = [1, 1]} : vector<8x33xf32> to vector<8x1xf32>
    %211 = arith.truncf %20 : vector<8x32xf32> to vector<8x32xbf16>
    %c0_53 = arith.constant 0 : index
    %c0_54 = arith.constant 0 : index
    %212 = vector.load %arg9[%c0_53, %c0_54] : memref<32x1xbf16, #tpu.memory_space<vmem>>, vector<32x1xbf16>
    %cst_55 = arith.constant dense<0.000000e+00> : vector<8x1xf32>
    %213 = tpu.matmul %211, %212, %cst_55 {dimension_numbers = #tpu.dot_dimension_numbers<[1], [0], [0], [1], [0, 0, 1, 1], [], []>} : vector<8x32xbf16>, vector<32x1xbf16>, vector<8x1xf32> -> vector<8x1xf32>
    %214 = arith.addf %213, %210 : vector<8x1xf32>
    %215 = arith.negf %214 : vector<8x1xf32>
    %216 = math.exp %215 : vector<8x1xf32>
    %cst_56 = arith.constant 1.000000e+00 : f32
    %217 = vector.broadcast %cst_56 : f32 to vector<8x1xf32>
    %218 = arith.addf %217, %216 : vector<8x1xf32>
    %219 = arith.divf %217, %218 : vector<8x1xf32>
    %220 = vector.broadcast %219 : vector<8x1xf32> to vector<8x32xf32>
    %221 = arith.mulf %220, %20 : vector<8x32xf32>
    %cst_57 = arith.constant 1.000000e+00 : f32
    %222 = vector.broadcast %cst_57 : f32 to vector<8x1xf32>
    %223 = arith.subf %222, %219 : vector<8x1xf32>
    %224 = vector.broadcast %223 : vector<8x1xf32> to vector<8x32xf32>
    %225 = arith.mulf %224, %209 : vector<8x32xf32>
    %226 = arith.addf %221, %225 : vector<8x32xf32>
    %227 = arith.truncf %226 : vector<8x32xf32> to vector<8x32xbf16>
    %c0_58 = arith.constant 0 : index
    %c0_59 = arith.constant 0 : index
    %228 = vector.load %arg10[%c0_58, %c0_59] : memref<32x16xbf16, #tpu.memory_space<vmem>>, vector<32x16xbf16>
    %cst_60 = arith.constant dense<0.000000e+00> : vector<8x16xf32>
    %229 = tpu.matmul %227, %228, %cst_60 {dimension_numbers = #tpu.dot_dimension_numbers<[1], [0], [0], [1], [0, 0, 1, 1], [], []>} : vector<8x32xbf16>, vector<32x16xbf16>, vector<8x16xf32> -> vector<8x16xf32>
    %230 = vector.broadcast %5 : vector<1x16xf32> to vector<8x16xf32>
    %231 = arith.addf %229, %230 : vector<8x16xf32>
    %232 = arith.truncf %231 : vector<8x16xf32> to vector<8x16xbf16>
    %c0_61 = arith.constant 0 : index
    %c0_62 = arith.constant 0 : index
    %233 = vector.load %arg12[%c0_61, %c0_62] : memref<8x16xbf16, #tpu.memory_space<vmem>>, vector<8x16xbf16>
    tpu.vector_store %arg12[%c0_61, %c0_62], %232 {strides = array<i32>} : memref<8x16xbf16, #tpu.memory_space<vmem>>, vector<8x16xbf16>,
    return
  }
  func.func @transform_0(%arg0: i32) -> (i32, i32) {
    %c0_i32 = arith.constant 0 : i32
    %c0_i32_0 = arith.constant 0 : i32
    return %arg0, %c0_i32 : i32, i32
  }
  func.func @transform_1(%arg0: i32) -> (i32, i32) {
    %c0_i32 = arith.constant 0 : i32
    %c0_i32_0 = arith.constant 0 : i32
    %c0_i32_1 = arith.constant 0 : i32
    return %c0_i32, %c0_i32_0 : i32, i32
  }
  func.func @transform_2(%arg0: i32) -> (i32, i32, i32) {
    %c0_i32 = arith.constant 0 : i32
    %c0_i32_0 = arith.constant 0 : i32
    %c0_i32_1 = arith.constant 0 : i32
    return %c0_i32, %arg0, %c0_i32_0 : i32, i32, i32
  }
  func.func @transform_3(%arg0: i32) -> (i32, i32) {
    %c0_i32 = arith.constant 0 : i32
    %c0_i32_0 = arith.constant 0 : i32
    %c0_i32_1 = arith.constant 0 : i32
    return %c0_i32, %c0_i32_0 : i32, i32
  }
  func.func @transform_4(%arg0: i32) -> (i32, i32) {
    %c0_i32 = arith.constant 0 : i32
    %c0_i32_0 = arith.constant 0 : i32
    %c0_i32_1 = arith.constant 0 : i32
    return %c0_i32, %c0_i32_0 : i32, i32
  }
  func.func @transform_5(%arg0: i32) -> (i32, i32) {
    %c0_i32 = arith.constant 0 : i32
    %c0_i32_0 = arith.constant 0 : i32
    %c0_i32_1 = arith.constant 0 : i32
    return %c0_i32, %c0_i32_0 : i32, i32
  }
  func.func @transform_6(%arg0: i32) -> (i32, i32) {
    %c0_i32 = arith.constant 0 : i32
    %c0_i32_0 = arith.constant 0 : i32
    %c0_i32_1 = arith.constant 0 : i32
    return %c0_i32, %c0_i32_0 : i32, i32
  }
  func.func @transform_7(%arg0: i32) -> (i32, i32) {
    %c0_i32 = arith.constant 0 : i32
    %c0_i32_0 = arith.constant 0 : i32
    %c0_i32_1 = arith.constant 0 : i32
    return %c0_i32, %c0_i32_0 : i32, i32
  }
  func.func @transform_8(%arg0: i32) -> (i32, i32) {
    %c0_i32 = arith.constant 0 : i32
    %c0_i32_0 = arith.constant 0 : i32
    %c0_i32_1 = arith.constant 0 : i32
    return %c0_i32, %c0_i32_0 : i32, i32
  }
  func.func @transform_9(%arg0: i32) -> (i32, i32) {
    %c0_i32 = arith.constant 0 : i32
    %c0_i32_0 = arith.constant 0 : i32
    %c0_i32_1 = arith.constant 0 : i32
    return %c0_i32, %c0_i32_0 : i32, i32
  }
  func.func @transform_10(%arg0: i32) -> (i32, i32) {
    %c0_i32 = arith.constant 0 : i32
    %c0_i32_0 = arith.constant 0 : i32
    %c0_i32_1 = arith.constant 0 : i32
    return %c0_i32, %c0_i32_0 : i32, i32
  }
  func.func @transform_11(%arg0: i32) -> (i32, i32) {
    %c0_i32 = arith.constant 0 : i32
    %c0_i32_0 = arith.constant 0 : i32
    return %arg0, %c0_i32 : i32, i32
  }
}

module attributes {stable_mosaic.version = 11 : i64} {
  func.func @match_head_kernel(%arg0: i32, %arg1: memref<8x2xi32, #tpu.memory_space<vmem>>, %arg2: memref<8x36xbf16, #tpu.memory_space<vmem>>, %arg3: memref<16x16xbf16, #tpu.memory_space<vmem>>, %arg4: memref<16x16xbf16, #tpu.memory_space<vmem>>, %arg5: memref<16x16xbf16, #tpu.memory_space<vmem>>, %arg6: memref<36x16xbf16, #tpu.memory_space<vmem>>, %arg7: memref<16x1xbf16, #tpu.memory_space<vmem>>, %arg8: memref<2x128xf32, #tpu.memory_space<vmem>>, %arg9: memref<8x128xf32, #tpu.memory_space<vmem>>) attributes {dimension_semantics = [#tpu.dimension_semantics<parallel>], iteration_bounds = array<i64: 1>, scalar_prefetch = 0 : i64, scratch_operands = 0 : i64, tpu.core_type = #tpu.core_type<tc>, window_params = [{transform_indices = @transform_0, window_bounds = array<i64: 8, 2>}, {transform_indices = @transform_1, window_bounds = array<i64: 8, 36>}, {pipeline_mode = #tpu.pipeline_mode<synchronous>, transform_indices = @transform_2, window_bounds = array<i64: 16, 16>}, {pipeline_mode = #tpu.pipeline_mode<synchronous>, transform_indices = @transform_3, window_bounds = array<i64: 16, 16>}, {pipeline_mode = #tpu.pipeline_mode<synchronous>, transform_indices = @transform_4, window_bounds = array<i64: 16, 16>}, {pipeline_mode = #tpu.pipeline_mode<synchronous>, transform_indices = @transform_5, window_bounds = array<i64: 36, 16>}, {pipeline_mode = #tpu.pipeline_mode<synchronous>, transform_indices = @transform_6, window_bounds = array<i64: 16, 1>}, {pipeline_mode = #tpu.pipeline_mode<synchronous>, transform_indices = @transform_7, window_bounds = array<i64: 2, 128>}, {transform_indices = @transform_8, window_bounds = array<i64: 8, 128>}]} {
    %c0 = arith.constant 0 : index
    %c0_0 = arith.constant 0 : index
    %0 = vector.load %arg8[%c0, %c0_0] : memref<2x128xf32, #tpu.memory_space<vmem>>, vector<1x16xf32>
    %c1 = arith.constant 1 : index
    %c0_1 = arith.constant 0 : index
    %1 = vector.load %arg8[%c1, %c0_1] : memref<2x128xf32, #tpu.memory_space<vmem>>, vector<1x1xf32>
    %c0_2 = arith.constant 0 : index
    %c0_3 = arith.constant 0 : index
    %2 = vector.load %arg1[%c0_2, %c0_3] : memref<8x2xi32, #tpu.memory_space<vmem>>, vector<8x2xi32>
    %3 = vector.extract_strided_slice %2 {offsets = [0, 0], sizes = [8, 1], strides = [1, 1]} : vector<8x2xi32> to vector<8x1xi32>
    %4 = vector.extract_strided_slice %2 {offsets = [0, 1], sizes = [8, 1], strides = [1, 1]} : vector<8x2xi32> to vector<8x1xi32>
    %5 = tpu.concatenate %3, %4 in 0 : vector<8x1xi32>, vector<8x1xi32> -> vector<16x1xi32>
    %6 = tpu.iota {dimensions = array<i32: 1>} : vector<16x16xi32>
    %7 = vector.broadcast %5 : vector<16x1xi32> to vector<16x16xi32>
    %8 = arith.cmpi eq, %6, %7 : vector<16x16xi32>
    %9 = arith.extui %8 : vector<16x16xi1> to vector<16x16xi32>
    %10 = arith.sitofp %9 : vector<16x16xi32> to vector<16x16xf32>
    %11 = arith.truncf %10 : vector<16x16xf32> to vector<16x16xbf16>
    %c0_4 = arith.constant 0 : index
    %c0_5 = arith.constant 0 : index
    %12 = vector.load %arg3[%c0_4, %c0_5] : memref<16x16xbf16, #tpu.memory_space<vmem>>, vector<16x16xbf16>
    %cst = arith.constant dense<0.000000e+00> : vector<16x16xf32>
    %13 = tpu.matmul %11, %12, %cst {dimension_numbers = #tpu.dot_dimension_numbers<[1], [0], [0], [1], [0, 0, 1, 1], [], []>} : vector<16x16xbf16>, vector<16x16xbf16>, vector<16x16xf32> -> vector<16x16xf32>
    %14 = vector.extract_strided_slice %13 {offsets = [0, 0], sizes = [8, 16], strides = [1, 1]} : vector<16x16xf32> to vector<8x16xf32>
    %15 = vector.extract_strided_slice %13 {offsets = [8, 0], sizes = [8, 16], strides = [1, 1]} : vector<16x16xf32> to vector<8x16xf32>
    %16 = arith.truncf %14 : vector<8x16xf32> to vector<8x16xbf16>
    %c0_6 = arith.constant 0 : index
    %c0_7 = arith.constant 0 : index
    %17 = vector.load %arg4[%c0_6, %c0_7] : memref<16x16xbf16, #tpu.memory_space<vmem>>, vector<16x16xbf16>
    %cst_8 = arith.constant dense<0.000000e+00> : vector<8x16xf32>
    %18 = tpu.matmul %16, %17, %cst_8 {dimension_numbers = #tpu.dot_dimension_numbers<[1], [0], [0], [1], [0, 0, 1, 1], [], []>} : vector<8x16xbf16>, vector<16x16xbf16>, vector<8x16xf32> -> vector<8x16xf32>
    %19 = arith.truncf %15 : vector<8x16xf32> to vector<8x16xbf16>
    %c0_9 = arith.constant 0 : index
    %c0_10 = arith.constant 0 : index
    %20 = vector.load %arg5[%c0_9, %c0_10] : memref<16x16xbf16, #tpu.memory_space<vmem>>, vector<16x16xbf16>
    %cst_11 = arith.constant dense<0.000000e+00> : vector<8x16xf32>
    %21 = tpu.matmul %19, %20, %cst_11 {dimension_numbers = #tpu.dot_dimension_numbers<[1], [0], [0], [1], [0, 0, 1, 1], [], []>} : vector<8x16xbf16>, vector<16x16xbf16>, vector<8x16xf32> -> vector<8x16xf32>
    %22 = arith.addf %18, %21 : vector<8x16xf32>
    %c0_12 = arith.constant 0 : index
    %c0_13 = arith.constant 0 : index
    %23 = vector.load %arg2[%c0_12, %c0_13] : memref<8x36xbf16, #tpu.memory_space<vmem>>, vector<8x36xbf16>
    %c0_14 = arith.constant 0 : index
    %c0_15 = arith.constant 0 : index
    %24 = vector.load %arg6[%c0_14, %c0_15] : memref<36x16xbf16, #tpu.memory_space<vmem>>, vector<36x16xbf16>
    %cst_16 = arith.constant dense<0.000000e+00> : vector<8x16xf32>
    %25 = tpu.matmul %23, %24, %cst_16 {dimension_numbers = #tpu.dot_dimension_numbers<[1], [0], [0], [1], [0, 0, 1, 1], [], []>} : vector<8x36xbf16>, vector<36x16xbf16>, vector<8x16xf32> -> vector<8x16xf32>
    %26 = arith.addf %22, %25 : vector<8x16xf32>
    %27 = vector.broadcast %0 : vector<1x16xf32> to vector<8x16xf32>
    %28 = arith.addf %26, %27 : vector<8x16xf32>
    %cst_17 = arith.constant 0.000000e+00 : f32
    %29 = vector.broadcast %cst_17 : f32 to vector<8x16xf32>
    %30 = arith.maximumf %28, %29 : vector<8x16xf32>
    %31 = arith.truncf %30 : vector<8x16xf32> to vector<8x16xbf16>
    %c0_18 = arith.constant 0 : index
    %c0_19 = arith.constant 0 : index
    %32 = vector.load %arg7[%c0_18, %c0_19] : memref<16x1xbf16, #tpu.memory_space<vmem>>, vector<16x1xbf16>
    %cst_20 = arith.constant dense<0.000000e+00> : vector<8x1xf32>
    %33 = tpu.matmul %31, %32, %cst_20 {dimension_numbers = #tpu.dot_dimension_numbers<[1], [0], [0], [1], [0, 0, 1, 1], [], []>} : vector<8x16xbf16>, vector<16x1xbf16>, vector<8x1xf32> -> vector<8x1xf32>
    %34 = vector.broadcast %1 : vector<1x1xf32> to vector<8x1xf32>
    %35 = arith.addf %33, %34 : vector<8x1xf32>
    %36 = arith.negf %35 : vector<8x1xf32>
    %37 = math.exp %36 : vector<8x1xf32>
    %cst_21 = arith.constant 1.000000e+00 : f32
    %38 = vector.broadcast %cst_21 : f32 to vector<8x1xf32>
    %39 = arith.addf %38, %37 : vector<8x1xf32>
    %40 = arith.divf %38, %39 : vector<8x1xf32>
    %41 = vector.shape_cast %40 : vector<8x1xf32> to vector<8x1xf32>
    %42 = vector.broadcast %41 : vector<8x1xf32> to vector<8x128xf32>
    %c0_22 = arith.constant 0 : index
    %c0_23 = arith.constant 0 : index
    %43 = vector.load %arg9[%c0_22, %c0_23] : memref<8x128xf32, #tpu.memory_space<vmem>>, vector<8x128xf32>
    tpu.vector_store %arg9[%c0_22, %c0_23], %42 {strides = array<i32>} : memref<8x128xf32, #tpu.memory_space<vmem>>, vector<8x128xf32>,
    return
  }
  func.func @transform_0(%arg0: i32) -> (i32, i32) {
    %c0_i32 = arith.constant 0 : i32
    %c0_i32_0 = arith.constant 0 : i32
    return %arg0, %c0_i32 : i32, i32
  }
  func.func @transform_1(%arg0: i32) -> (i32, i32) {
    %c0_i32 = arith.constant 0 : i32
    %c0_i32_0 = arith.constant 0 : i32
    return %arg0, %c0_i32 : i32, i32
  }
  func.func @transform_2(%arg0: i32) -> (i32, i32) {
    %c0_i32 = arith.constant 0 : i32
    %c0_i32_0 = arith.constant 0 : i32
    %c0_i32_1 = arith.constant 0 : i32
    return %c0_i32, %c0_i32_0 : i32, i32
  }
  func.func @transform_3(%arg0: i32) -> (i32, i32) {
    %c0_i32 = arith.constant 0 : i32
    %c0_i32_0 = arith.constant 0 : i32
    %c0_i32_1 = arith.constant 0 : i32
    return %c0_i32, %c0_i32_0 : i32, i32
  }
  func.func @transform_4(%arg0: i32) -> (i32, i32) {
    %c0_i32 = arith.constant 0 : i32
    %c0_i32_0 = arith.constant 0 : i32
    %c0_i32_1 = arith.constant 0 : i32
    return %c0_i32, %c0_i32_0 : i32, i32
  }
  func.func @transform_5(%arg0: i32) -> (i32, i32) {
    %c0_i32 = arith.constant 0 : i32
    %c0_i32_0 = arith.constant 0 : i32
    %c0_i32_1 = arith.constant 0 : i32
    return %c0_i32, %c0_i32_0 : i32, i32
  }
  func.func @transform_6(%arg0: i32) -> (i32, i32) {
    %c0_i32 = arith.constant 0 : i32
    %c0_i32_0 = arith.constant 0 : i32
    %c0_i32_1 = arith.constant 0 : i32
    return %c0_i32, %c0_i32_0 : i32, i32
  }
  func.func @transform_7(%arg0: i32) -> (i32, i32) {
    %c0_i32 = arith.constant 0 : i32
    %c0_i32_0 = arith.constant 0 : i32
    %c0_i32_1 = arith.constant 0 : i32
    return %c0_i32, %c0_i32_0 : i32, i32
  }
  func.func @transform_8(%arg0: i32) -> (i32, i32) {
    %c0_i32 = arith.constant 0 : i32
    %c0_i32_0 = arith.constant 0 : i32
    return %arg0, %c0_i32 : i32, i32
  }
}

</mosaic_0001>

<bundles_post_ra>
// kernel: tennis_forward.3
= control target key start
LH: loop header
LB: loop body
LE: loop exit
PB: predicated region body
PF: predicated region fallthrough
CT: control target
= control target key end

     0   :  { %s535_s18 = smov 0   ;;  %s582_s0 = inlined_call_operand.vmem [shape: bf16[16,16], index: 0, kind: input, shape index: {}]   ;;  %s583_s1 = inlined_call_operand.vmem [shape: bf16[16,4], index: 1, kind: input, shape index: {}]   ;;  %s584_s2 = inlined_call_operand.vmem [shape: bf16[4,32], index: 2, kind: input, shape index: {}]   ;;  %s585_s3 = inlined_call_operand.vmem [shape: bf16[4,32], index: 3, kind: input, shape index: {}]   ;;  %s586_s4 = inlined_call_operand.vmem [shape: f32[1,32], index: 4, kind: input, shape index: {}]   ;;  %s587_s5 = inlined_call_operand.vmem [shape: bf16[16,32], index: 5, kind: output, shape index: {}]  }
   0x1 LB: > { %s541_s19 = sadd.s32 4294967295, %s501_s18   ;;  %p448_p0 = scmp.ge.s32.totalorder %s501_s18, 1  ;;  %s501_s18 = sphi %s535_s18, %s15_s18  }
   0x2   : > { %p186_p1 = scmp.lt.s32.totalorder %s501_s18, 3 }
   0x4   : > { %p187_p2 = pnand %p448_p0, %p186_p1 }
   0x5   : > { %v494_v0 = vld [vmem:[%s583_s1] sm:$0xff] (!%p187_p2)   ;;  %v503_v1 = vmov (!%p187_p2), 0.0   ;;  %p212_p3 = scmp.lt.s32.totalorder (!%p187_p2), %s541_s19, 1  ;;  %vm287_vm0 = vcmask (!%p187_p2), 1041408   ;;  %vm504_vm1 = vmmov (!%p187_p2), 0   ;;  %vm231_vm2 = vcmask (!%p187_p2), 130048  }
   0x6   : > { %190 = sbr.rel (%p187_p2) target bundleno = 453 (0x1c5), region = 40  ;;  %466 = vmatprep.subr.bf16.mxu0 (!%p187_p2), %v503_v1  ;;  %472 = vmatprep.subr.bf16.mxu1 (!%p187_p2), %v503_v1  ;;  %v282_v2 = vld [vmem:[%s585_s3] sm:$0x3] (!%p187_p2)  ;;  %s451_s6 = sshll.u32 (!%p187_p2), %s541_s19, 3  ;;  %vm283_vm3 = vcmask (!%p187_p2), 31744   ;;  %vm387_vm4 = vcmask (!%p187_p2), 257024  }
   0x7   : > { %467 = vmatpush3.bf16.msra.mxu0 (!%p187_p2), %v494_v0  ;;  %468 = vmatprep.mubr.msk.bf16.mxu0 (!%p187_p2), %vm504_vm1, %v503_v1  ;;  %v281_v3 = vld [vmem:[%s584_s2] sm:$0x3] (!%p187_p2)  ;;  %v289_v4 = vsel (!%p187_p2), %vm287_vm0, %v282_v2, 0  ;;  %s275_s7 = sshra.s32 (!%p187_p2), %s451_s6, 3 }
   0x8   : > { %478 = vmatprep.subr.bf16.mxu0 (!%p187_p2), %v503_v1  ;;  %474 = vmatprep.mubr.msk.bf16.mxu1 (!%p187_p2), %vm504_vm1, %v503_v1  ;;  %v335_v5 = vsel (!%p187_p2), %vm287_vm0, %v281_v3, 0  ;;  %s454_s8 = sshll.u32 (!%p187_p2), %s275_s7, 2  ;;  %v457_v18 = vld [vmem:[%s586_s4] ss:$0 sm:$0xff] (!%p187_p2) }
   0x9   : > { %473 = vmatpush3.bf16.msra.mxu1 (!%p187_p2), %v289_v4  ;;  %s278_s11 = scalar_lea.vmem (!%p187_p2), %s583_s1, %s454_s8 }
   0xa   : > { %v279_v7 = vld [vmem:[%s278_s11] sm:$0xf] (!%p187_p2) }
   0xc   : > { %475 = vmatmul.mubr.msk.bf16.vlgmr.msra.gmra.mrb[0].mxu1 (!%p187_p2), %vm283_vm3, %v279_v7 }
   0xd   : > { %s554_s24 = scalar_select %p212_p3, %s541_s19, 1 }
   0xf   : > { %s449_s27 = sshll.u32 %s554_s24, 2 }
  0x10   : > { %s215_s30 = scalar_lea.vmem %s582_s0, %s449_s27  ;;  %s219_s16 = scalar_lea.vmem %s587_s5, %s449_s27 }
  0x11   : > { %v222_v6 = vld [vmem:[%s215_s30] sm:$0xf] }
  0x12   : > { %469 = vmatmul.mubr.msk.bf16.vlgmr.msra.gmra.mrb[0].mxu0 %vm231_vm2, %v222_v6 }
  0x13   : > { %479 = vmatpush3.bf16.msra.mxu0 %v335_v5  ;;  %480 = vmatprep.mubr.msk.bf16.mxu0 %vm504_vm1, %v503_v1 }
  0xdf   : > { %v325_v13 = vpop.f32.mrb[0].mxu1 }
  0xe0   : > { %v476_v14 = vpop.f32.mrb[1].mxu1 }
  0xe1   : > { %v328_v15 = vpop.f32.mrb[2].mxu1 }
  0xe2   : > { %v477_v16 = vpop.f32.mrb[3].mxu1 }
  0xe5   : > { %v269_v8 = vpop.f32.mrb[0].mxu0 }
  0xe6   : > { %v280_v9 = vpack.c.bf16 %v269_v8, %v269_v8  ;;  %v470_v10 = vpop.f32.mrb[1].mxu0 }
  0xe7   : > { %v272_v11 = vpop.f32.mrb[2].mxu0 }
  0xe8   : > { %v471_v12 = vpop.f32.mrb[3].mxu0  ;;  %481 = vmatmul.mubr.msk.bf16.vlgmr.msra.gmra.mrb[4].mxu0 %vm283_vm3, %v280_v9 }
 0x1bb   : > { %v371_v17 = vpop.f32.mrb[4].mxu0 }
 0x1bc   : > { %v372_v19 = vadd.f32 %v371_v17, %v325_v13  ;;  %v482_v20 = vpop.f32.mrb[5].mxu0 }
 0x1bd   : > { %v374_v21 = vpop.f32.mrb[6].mxu0 }
 0x1be   : > { %v384_v22 = vadd.f32 %v457_v18, %v372_v19  ;;  %v483_v23 = vpop.f32.mrb[7].mxu0 }
 0x1c0   : > { %v385_v24 = vmax.f32 %v384_v22, 0.0 }
 0x1c2   : > { %v386_v25 = vpack.c.bf16 %v385_v24, %v385_v24 }
 0x1c4   : > { %388 = vst.msk [vmem:[%s219_s16] sm:$0xf] %vm387_vm4, %v386_v25 }
 0x1c5 PF: > { %s15_s18 = sadd.s32 1, %s501_s18  }
 0x1c6   : > { %p12_p4 = scmp.ge.s32.totalorder %s15_s18, 4  }
 0x1c8   :  { %14 = sbr.rel (!%p12_p4) target bundleno = 1 (0x1), region = 71 }

// kernel: tennis_forward.5
= control target key start
LH: loop header
LB: loop body
LE: loop exit
PB: predicated region body
PF: predicated region fallthrough
CT: control target
= control target key end

     0   :  { %v435_v1 = vmov 0   ;;  %s436_s29 = smov 127   ;;  %v437_v2 = vmov 0.0   ;;  %vm438_vm0 = vmmov 0   ;;  %v35_v5 = vlaneseq  ;;  %s529_s0 = inlined_call_operand.vmem [shape: s32[8,2], index: 0, kind: input, shape index: {}]   ;;  %s530_s2 = inlined_call_operand.vmem [shape: bf16[16,16], index: 2, kind: input, shape index: {}]   ;;  %s531_s3 = inlined_call_operand.vmem [shape: bf16[16,16], index: 3, kind: input, shape index: {}]   ;;  %s532_s4 = inlined_call_operand.vmem [shape: bf16[16,16], index: 4, kind: input, shape index: {}]   ;;  %s533_s5 = inlined_call_operand.vmem [shape: bf16[36,16], index: 5, kind: input, shape index: {}]   ;;  %s534_s1 = inlined_call_operand.vmem [shape: bf16[8,36], index: 1, kind: input, shape index: {}]   ;;  %s535_s6 = inlined_call_operand.vmem [shape: bf16[16,1], index: 6, kind: input, shape index: {}]   ;;  %s536_s7 = inlined_call_operand.vmem [shape: f32[2,128], index: 7, kind: input, shape index: {}]   ;;  %s537_s8 = inlined_call_operand.vmem [shape: f32[8,128], index: 8, kind: output, shape index: {}]  }
   0x1   :  { %v32_v0 = vld [vmem:[%s529_s0] sm:$0xff]  ;;  %423 = vset.pattern.permute.xlu1 %v435_v1  ;;  %422 = vset.pattern.permute.xlu0 %v435_v1  ;;  %vm58_vm3 = vcmask 130048   ;;  %v428_v21 = vld [vmem:[%s533_s5 + $0x8] sm:$0xff]   ;;  %v429_v22 = vld [vmem:[%s533_s5 + $0x10] ss:$0 sps:$4 sm:$0x33]  }
   0x2   :  { %33 = vrot.lane.b32.xlu0 %v32_v0, %s436_s29  ;;  %384 = vmatprep.subr.bf16.mxu0 %v437_v2  ;;  %v424_v4 = vld [vmem:[%s530_s2] sm:$0xff]   ;;  %v36_v6 = vand.u32 127, %v35_v5  ;;  %vm232_vm4 = vcmask 1041408   ;;  %vm228_vm5 = vcmask 293888  }
   0x3   :  { %390 = vmatprep.subr.bf16.mxu1 %v437_v2  ;;  %385 = vmatpush3.bf16.msra.mxu0 %v424_v4  ;;  %v425_v12 = vld [vmem:[%s531_s3] sm:$0xff]   ;;  %v234_v23 = vsel %vm232_vm4, %v429_v22, 0 }
   0x4   :  { %396 = vmatprep.subr.bf16.mxu0 %v437_v2  ;;  %386 = vmatprep.mubr.msk.bf16.mxu0 %vm438_vm0, %v437_v2  ;;  %v426_v13 = vld [vmem:[%s532_s4] sm:$0xff]  }
   0x5   :  { %392 = vmatprep.mubr.msk.bf16.mxu1 %vm438_vm0, %v437_v2  ;;  %391 = vmatpush3.bf16.msra.mxu1 %v426_v13  ;;  %v427_v18 = vld [vmem:[%s533_s5] sm:$0xff]  }
   0x6   :  { %38 = vperm.xlu0 %422, %v32_v0   ;;  %402 = vmatprep.subr.bf16.mxu1 %v437_v2  ;;  %v207_v24 = vld [vmem:[%s534_s1] sm:$0xf] }
   0x7   :  { %v430_v25 = vld [vmem:[%s535_s6] sm:$0xff]  }
   0x8   :  { %v367_v35 = vld [vmem:[%s536_s7] ss:$0 sm:$0xff]  ;;  %v368_v44 = vld [vmem:[%s536_s7 + $0x1] ss:$0 sm:$0xff] }
  0x74   :  { %v34_v3 = vpop.permute.xlu0 %33 }
  0x75   :  { %41 = vperm.xlu1 %423, %v34_v3  }
  0x85   :  { %v39_v7 = vpop.permute.xlu0 %38 }
  0x86   :  { %vm43_vm1 = vcmp.eq.s32.totalorder %v36_v6, %v39_v7 }
  0x87   :  { %v355_v9 = vsel %vm43_vm1, 1.0, %v437_v2 }
  0xf4   :  { %v42_v8 = vpop.permute.xlu1 %41 }
  0xf5   :  { %vm44_vm2 = vcmp.eq.s32.totalorder %v36_v6, %v42_v8 }
  0xf6   :  { %v356_v10 = vsel %vm44_vm2, 1.0, %v437_v2 }
  0xf7   :  { %v49_v11 = vpack.c.bf16 %v356_v10, %v355_v9 }
  0xf9   :  { %387 = vmatmul.mubr.msk.bf16.vlgmr.msra.gmra.mrb[0].mxu0 %vm58_vm3, %v49_v11 }
  0xfa   :  { %398 = vmatprep.mubr.msk.bf16.mxu0 %vm438_vm0, %v437_v2  ;;  %397 = vmatpush3.bf16.msra.mxu0 %v425_v12 }
  0xfb   :  { %412 = vmatprep.subr.bf16.mxu0 %v437_v2 }
 0x1cc   :  { %v96_v14 = vpop.f32.mrb[0].mxu0 }
 0x1cd   :  { %v103_v15 = vpack.c.bf16 %v96_v14, %v96_v14  ;;  %v388_v16 = vpop.f32.mrb[1].mxu0 }
 0x1ce   :  { %v99_v17 = vpop.f32.mrb[2].mxu0 }
 0x1cf   :  { %v106_v19 = vpack.c.bf16 %v99_v17, %v99_v17  ;;  %v389_v20 = vpop.f32.mrb[3].mxu0  ;;  %399 = vmatmul.mubr.msk.bf16.vlgmr.msra.gmra.mrb[4].mxu0 %vm58_vm3, %v103_v15 }
 0x1d0   :  { %414 = vmatprep.mubr.msk.bf16.mxu0 %vm438_vm0, %v437_v2  ;;  %413 = vmatpush3.bf16.msra.mxu0 %v430_v25 }
 0x1d1   :  { %393 = vmatmul.mubr.msk.bf16.vlgmr.msra.gmra.mrb[0].mxu1 %vm58_vm3, %v106_v19 }
 0x1d2   :  { %403 = vmatpush3.bf16.msra.mxu1 %v427_v18  ;;  %408 = vmatprep.mubr.msk.bf16.mxu1 %vm438_vm0, %v437_v2 }
 0x1d3   :  { %404 = vmatprep.subr.bf16.mxu1 %v437_v2 }
 0x1d6   :  { %405 = vmatpush3.bf16.msra.mxu1 %v428_v21 }
 0x1d7   :  { %406 = vmatprep.subr.bf16.mxu1 %v437_v2 }
 0x1da   :  { %407 = vmatpush3.bf16.msra.mxu1 %v234_v23 }
 0x1dd   :  { %409 = vmatmul.mubr.msk.bf16.vlgmr.msra.gmra.mrb[4].mxu1 %vm228_vm5, %v207_v24 }
 0x2a2   :  { %v201_v26 = vpop.f32.mrb[4].mxu0 }
 0x2a3   :  { %v400_v27 = vpop.f32.mrb[5].mxu0 }
 0x2a4   :  { %v152_v28 = vpop.f32.mrb[0].mxu1  ;;  %v204_v29 = vpop.f32.mrb[6].mxu0 }
 0x2a5   :  { %v202_v30 = vadd.f32 %v201_v26, %v152_v28  ;;  %v394_v31 = vpop.f32.mrb[1].mxu1  ;;  %v401_v32 = vpop.f32.mrb[7].mxu0 }
 0x2a6   :  { %v155_v33 = vpop.f32.mrb[2].mxu1 }
 0x2a7   :  { %v395_v34 = vpop.f32.mrb[3].mxu1 }
 0x2b0   :  { %v270_v36 = vpop.f32.mrb[4].mxu1 }
 0x2b1   :  { %v276_v37 = vadd.f32 %v270_v36, %v202_v30  ;;  %v410_v38 = vpop.f32.mrb[5].mxu1 }
 0x2b2   :  { %v273_v39 = vpop.f32.mrb[6].mxu1 }
 0x2b3   :  { %v281_v40 = vadd.f32 %v367_v35, %v276_v37  ;;  %v411_v41 = vpop.f32.mrb[7].mxu1 }
 0x2b5   :  { %v282_v42 = vmax.f32 %v281_v40, 0.0 }
 0x2b7   :  { %v283_v43 = vpack.c.bf16 %v282_v42, %v282_v42 }
 0x2b9   :  { %415 = vmatmul.mubr.msk.bf16.vlgmr.msra.gmra.mrb[8].mxu0 %vm58_vm3, %v283_v43 }
 0x38c   :  { %v333_v45 = vpop.f32.mrb[8].mxu0 }
 0x38d   :  { %v334_v46 = vadd.f32 %v368_v44, %v333_v45  ;;  %v416_v47 = vpop.f32.mrb[9].mxu0 }
 0x38e   :  { %v336_v48 = vpop.f32.mrb[10].mxu0 }
 0x38f   :  { %v371_v49 = vmul.f32 -1.442695, %v334_v46  ;;  %v417_v50 = vpop.f32.mrb[11].mxu0 }
 0x391   :  { %431 = vpow2.f32 %v371_v49 }
 0x39b   :  { %v432_v51 = vpop.eup %431 }
 0x39c   :  { %v342_v52 = vadd.f32 1.0, %v432_v51 }
 0x39e   :  { %433 = vrcp.f32 %v342_v52 }
 0x3a8   :  { %v434_v53 = vpop.eup %433 }
 0x3a9   :  { %347 = vperm.xlu1 %423, %v434_v53  }
 0x428   :  { %v348_v54 = vpop.permute.xlu1 %347 }
 0x429   :  { %350 = vst [vmem:[%s537_s8] sm:$0xff] %v348_v54 }

// kernel: tennis_forward.4
= control target key start
LH: loop header
LB: loop body
LE: loop exit
PB: predicated region body
PF: predicated region fallthrough
CT: control target
= control target key end

     0   :  { %s1838_s17 = smov 0   ;;  %s1840_s18 = smov 0   ;;  %s2072_s0 = inlined_call_operand.vmem [shape: bf16[16,16], index: 0, kind: input, shape index: {}]   ;;  %s2073_s1 = inlined_call_operand.vmem [shape: bf16[16,32], index: 1, kind: input, shape index: {}]   ;;  %s2074_s2 = inlined_call_operand.vmem [shape: bf16[6,16,4], index: 2, kind: input, shape index: {}]   ;;  %s2075_s3 = inlined_call_operand.vmem [shape: bf16[32,32], index: 3, kind: input, shape index: {}]   ;;  %s2076_s4 = inlined_call_operand.vmem [shape: bf16[32,32], index: 4, kind: input, shape index: {}]   ;;  %s2077_s5 = inlined_call_operand.vmem [shape: bf16[4,64], index: 5, kind: input, shape index: {}]   ;;  %s2078_s6 = inlined_call_operand.vmem [shape: bf16[16,64], index: 6, kind: input, shape index: {}]   ;;  %s2079_s7 = inlined_call_operand.vmem [shape: bf16[16,33], index: 7, kind: input, shape index: {}]   ;;  %s2080_s8 = inlined_call_operand.vmem [shape: bf16[32,1], index: 8, kind: input, shape index: {}]   ;;  %s2081_s9 = inlined_call_operand.vmem [shape: bf16[32,16], index: 9, kind: input, shape index: {}]   ;;  %s2082_s10 = inlined_call_operand.vmem [shape: f32[4,128], index: 10, kind: input, shape index: {}]   ;;  %s2083_s11 = inlined_call_operand.vmem [shape: bf16[16,16], index: 11, kind: output, shape index: {}]  }
   0x1   :  { %s1842_s19 = smov 0  }
   0x2 LB: > { %s1854_s20 = sadd.s32 4294967295, %s1769_s19   ;;  %s1857_s21 = sadd.s32 1, %s1769_s19   ;;  %s1769_s19 = sphi %s1842_s19, %s2086_s19   ;;  %s1765_s18 = sphi %s1840_s18, %s2085_s18   ;;  %s1761_s17 = sphi %s1838_s17, %s2084_s17  }
   0x3   : > { %s72_s22 = ssub.s32 %s1769_s19, %s1857_s21  ;;  %s75_s23 = sadd.s32 1, %s1765_s18 }
   0x4   : > { %p73_p0 = scmp.eq.s32.totalorder %s72_s22, 0  ;;  %p82_p1 = scmp.ne.s32.totalorder %s1765_s18, %s1761_s17 }
   0x5   : > { %p83_p2 = scmp.eq.s32.totalorder %s1769_s19, 0  ;;  %p1472_p4 = scmp.ge.s32.totalorder %s1769_s19, 2 }
   0x6   : > { %s1866_s24 = scalar_select %p73_p0, %s1765_s18, %s75_s23  }
   0x7   : > { %p84_p3 = por %p83_p2, %p82_p1  ;;  %329 = sbr.rel (%p1472_p4) target bundleno = 22 (0x16), region = 52 }
   0xe   : > { %339 = sbr.rel (!%p84_p3) target bundleno = 22 (0x16), region = 60  ;;  %s341_s25 = sand.u32 (%p84_p3), 1, %s1765_s18  }
   0xf   : > { %s1473_s26 = sshll.u32 (%p84_p3), %s1769_s19, 2  ;;  %s1646_s27 = smul.u32 (%p84_p3), 24, %s341_s25 }
  0x10   : > { %s345_s30 = scalar_lea.vmem (%p84_p3), %s2074_s2, %s1473_s26 }
  0x11   : > { %v361_v0 = vld [vmem:[%s345_s30] sm:$0xf] (%p84_p3)  ;;  %v363_v1 = vld [vmem:[%s345_s30 + $0x8] sm:$0xf] (%p84_p3)  ;;  %v365_v2 = vld [vmem:[%s345_s30 + $0x10] sm:$0xf] (%p84_p3) }
  0x12   : > { %v367_v3 = vld [vmem:[%s345_s30 + $0x18] sm:$0xf] (%p84_p3)  ;;  %v369_v4 = vld [vmem:[%s345_s30 + $0x20] sm:$0xf] (%p84_p3)  ;;  %s343_s12 = scalar_lea.vmem (%p84_p3), [#allocation2], %s1646_s27 }
  0x13   : > { %362 = vst [vmem:[%s343_s12] sm:$0xf] (%p84_p3), %v361_v0  ;;  %364 = vst [vmem:[%s343_s12 + $0x4] sm:$0xf] (%p84_p3), %v363_v1  ;;  %v371_v5 = vld [vmem:[%s345_s30 + $0x28] sm:$0xf] (%p84_p3) }
  0x14   : > { %366 = vst [vmem:[%s343_s12 + $0x8] sm:$0xf] (%p84_p3), %v365_v2  ;;  %368 = vst [vmem:[%s343_s12 + $0xc] sm:$0xf] (%p84_p3), %v367_v3 }
  0x15   : > { %370 = vst [vmem:[%s343_s12 + $0x10] sm:$0xf] %v369_v4  ;;  %372 = vst [vmem:[%s343_s12 + $0x14] sm:$0xf] %v371_v5 }
  0x16 PF: > { %p1474_p5 = scmp.ge.s32.totalorder %s1769_s19, 1  ;;  %p406_p6 = scmp.lt.s32.totalorder %s1769_s19, 3 }
  0x18   : > { %p407_p7 = pnand %p1474_p5, %p406_p6 }
  0x19   : > { %v1681_v6 = vld [vmem:[%s2073_s1] sm:$0xff] (!%p407_p7)   ;;  %v1771_v7 = vmov (!%p407_p7), 0.0   ;;  %p455_p8 = scmp.lt.s32.totalorder (!%p407_p7), %s1854_s20, 1  ;;  %vm1772_vm0 = vmmov (!%p407_p7), 0   ;;  %v1683_v9 = vld [vmem:[%s2076_s4 + $0x8] sm:$0xff] (!%p407_p7)   ;;  %vm483_vm1 = vcmask (!%p407_p7), 130048  }
  0x1a   : > { %410 = sbr.rel (%p407_p7) target bundleno = 5194 (0x144a), region = 101  ;;  %1552 = vmatprep.subr.bf16.mxu0 (!%p407_p7), %v1771_v7  ;;  %1558 = vmatprep.subr.bf16.mxu1 (!%p407_p7), %v1771_v7  ;;  %v1682_v8 = vld [vmem:[%s2076_s4] sm:$0xff] (!%p407_p7)   ;;  %s1477_s27 = sshll.u32 (!%p407_p7), %s1854_s20, 3  ;;  %vm548_vm2 = vcmask (!%p407_p7), 261120   ;;  %v1685_v12 = vld [vmem:[%s2075_s3 + $0x8] sm:$0xff] (!%p407_p7)   ;;  %vm689_vm3 = vcmask (!%p407_p7), 1041408  }
  0x1b   : > { %1553 = vmatpush3.bf16.msra.mxu0 (!%p407_p7), %v1681_v6  ;;  %1554 = vmatprep.mubr.msk.bf16.mxu0 (!%p407_p7), %vm1772_vm0, %v1771_v7  ;;  %v1684_v10 = vld [vmem:[%s2075_s3] sm:$0xff] (!%p407_p7)   ;;  %s471_s29 = sshra.s32 (!%p407_p7), %s1477_s27, 3  ;;  %s413_s25 = sand.u32 (!%p407_p7), 1, %s1761_s17   ;;  %vm679_vm4 = vcmask (!%p407_p7), 31744   ;;  %v1773_v18 = vmov (!%p407_p7), 0   ;;  %vm1394_vm5 = vcmask (!%p407_p7), 125952  }
  0x1c   : > { %1559 = vmatpush3.bf16.msra.mxu1 (!%p407_p7), %v1682_v8  ;;  %1566 = vmatprep.subr.bf16.mxu0 (!%p407_p7), %v1771_v7  ;;  %s1478_s14 = sshll.u32 (!%p407_p7), %s471_s29, 2  ;;  %v659_v14 = vld [vmem:[%s2077_s5] sm:$0x3] (!%p407_p7)  ;;  %s1647_s29 = smul.u32 (!%p407_p7), 24, %s413_s25 }
  0x1d   : > { %1560 = vmatprep.subr.bf16.mxu1 (!%p407_p7), %v1771_v7  ;;  %1562 = vmatprep.mubr.msk.bf16.mxu1 (!%p407_p7), %vm1772_vm0, %v1771_v7  ;;  %s474_s23 = scalar_lea.vmem (!%p407_p7), %s2073_s1, %s1478_s14  ;;  %v691_v15 = vsel (!%p407_p7), %vm689_vm3, %v659_v14, 0  ;;  %v1933_v17 = vld [vmem:[%s2078_s6] sm:$0xff] (!%p407_p7)   ;;  %s1774_s15 = smov (!%p407_p7), 96  }
  0x1e   : > { %v475_v13 = vld [vmem:[%s474_s23] sm:$0xf] (!%p407_p7)  ;;  %s1926_s30 = scalar_lea.vmem (!%p407_p7), [#allocation2], %s1647_s29  ;;  %1679 = vset.pattern.permute.xlu1 (!%p407_p7), %v1773_v18  ;;  %1680 = vset.pattern.permute.xlu0 (!%p407_p7), %v1773_v18  ;;  %s1775_s16 = smov (!%p407_p7), 16  }
  0x1f   : > { %v1687_v16 = vld [vmem:[%s1926_s30] sm:$0xff] (!%p407_p7)   ;;  %s1776_s22 = smov (!%p407_p7), 32  }
  0x20   : > { %1561 = vmatpush3.bf16.msra.mxu1 (!%p407_p7), %v1683_v9  ;;  %v1954_v36 = vld [vmem:[%s2082_s10 + $0x1] ss:$0 sm:$0xff] (!%p407_p7) }
  0x21   : > { %s1888_s19 = scalar_select %p455_p8, %s1854_s20, 1  ;;  %1574 = vmatprep.subr.bf16.mxu1 %v1771_v7 }
  0x22   : > { %s1777_s20 = smov 80  }
  0x23   : > { %s1475_s28 = sshll.u32 %s1888_s19, 2  ;;  %1563 = vmatmul.mubr.msk.bf16.vlgmr.msra.gmra.mrb[0].mxu1 %vm548_vm2, %v475_v13 }
  0x24   : > { %s458_s13 = scalar_lea.vmem %s2072_s0, %s1475_s28  ;;  %1576 = vmatprep.mubr.msk.bf16.mxu1 %vm1772_vm0, %v1771_v7  ;;  %1575 = vmatpush3.bf16.msra.mxu1 %v691_v15  ;;  %s462_s29 = scalar_lea.vmem %s2083_s11, %s1475_s28 }
  0x25   : > { %v476_v11 = vld [vmem:[%s458_s13] sm:$0xf]  ;;  %1606 = vmatprep.subr.bf16.mxu1 %v1771_v7 }
  0x26   : > { %1555 = vmatmul.mubr.msk.bf16.vlgmr.msra.gmra.mrb[0].mxu0 %vm483_vm1, %v476_v11 }
  0x27   : > { %1567 = vmatpush3.bf16.msra.mxu0 %v1684_v10  ;;  %1570 = vmatprep.mubr.msk.bf16.mxu0 %vm1772_vm0, %v1771_v7 }
  0x28   : > { %1568 = vmatprep.subr.bf16.mxu0 %v1771_v7 }
  0x2b   : > { %1569 = vmatpush3.bf16.msra.mxu0 %v1685_v12  ;;  %1577 = vmatmul.mubr.msk.bf16.vlgmr.msra.gmra.mrb[4].mxu1 %vm679_vm4, %v1687_v16  ;;  %v1688_v12 = vld [vmem:[%s1926_s30 + $0x8] sm:$0xff]  }
  0x2c   : > { %1588 = vmatprep.subr.bf16.mxu0 %v1771_v7  ;;  %1580 = vmatprep.mubr.msk.bf16.mxu1 %vm1772_vm0, %v1771_v7 }
  0x2d   : > { %1607 = vmatpush3.bf16.msra.mxu1 %v1933_v17 }
  0x2e   : > { %1618 = vmatprep.subr.bf16.mxu1 %v1771_v7 }
  0x33   : > { %1581 = vmatmul.mubr.msk.bf16.gmra.mrb[8].mxu1 %vm679_vm4, %v1688_v12 }
  0x34   : > { %1584 = vmatprep.mubr.msk.bf16.mxu1 %vm1772_vm0, %v1771_v7 }
  0xf6   : > { %v586_v23 = vpop.f32.mrb[0].mxu1 }
  0xf7   : > { %v1564_v25 = vpop.f32.mrb[1].mxu1 }
  0xf8   : > { %v589_v26 = vpop.f32.mrb[2].mxu1 }
  0xf9   : > { %v521_v19 = vpop.f32.mrb[0].mxu0  ;;  %v1565_v27 = vpop.f32.mrb[3].mxu1 }
  0xfa   : > { %v527_v20 = vpack.c.bf16 %v521_v19, %v521_v19  ;;  %v1556_v21 = vpop.f32.mrb[1].mxu0 }
  0xfb   : > { %v524_v22 = vpop.f32.mrb[2].mxu0 }
  0xfc   : > { %v1557_v24 = vpop.f32.mrb[3].mxu0  ;;  %1571 = vmatmul.mubr.msk.bf16.vlgmr.msra.gmra.mrb[4].mxu0 %vm548_vm2, %v527_v20 }
  0xfd   : > { %1589 = vmatpush3.bf16.msra.mxu0 %v1933_v17  ;;  %1590 = vmatprep.mubr.msk.bf16.mxu0 %vm1772_vm0, %v1771_v7 }
  0xfe   : > { %1594 = vmatprep.subr.bf16.mxu0 %v1771_v7  ;;  %v727_v28 = vpop.f32.mrb[4].mxu1 }
  0xff   : > { %v1578_v29 = vpop.f32.mrb[5].mxu1  ;;  %v728_v38 = vadd.f32 %v1954_v36, %v727_v28 }
 0x100   : > { %v730_v30 = vpop.f32.mrb[6].mxu1 }
 0x101   : > { %v1579_v31 = vpop.f32.mrb[7].mxu1  ;;  %v731_v59 = vadd.f32 %v1954_v36, %v730_v30 }
 0x104   : > { %1591 = vmatmul.mubr.bf16.vlgmr.msra.gmra.mrb[8].mxu0 %v1773_v18 }
 0x105   : > { %1595 = vmatpush3.bf16.msra.mxu0 %v1933_v17  ;;  %1596 = vmatprep.mubr.msk.bf16.mxu0 %vm1772_vm0, %v1771_v7 }
 0x106   : > { %1600 = vmatprep.subr.bf16.mxu0 %v1771_v7  ;;  %v735_v18 = vpop.f32.mrb[8].mxu1 }
 0x107   : > { %v1582_v19 = vpop.f32.mrb[9].mxu1 }
 0x108   : > { %v738_v20 = vpop.f32.mrb[10].mxu1 }
 0x109   : > { %v1583_v21 = vpop.f32.mrb[11].mxu1 }
 0x1cf   : > { %v641_v32 = vpop.f32.mrb[4].mxu0 }
 0x1d0   : > { %v1949_v33 = vadd.f32 %v641_v32, %v586_v23  ;;  %v1572_v34 = vpop.f32.mrb[5].mxu0  ;;  %v736_v23 = vadd.f32 %v1954_v36, %v735_v18 }
 0x1d1   : > { %v644_v35 = vpop.f32.mrb[6].mxu0 }
 0x1d2   : > { %v1573_v37 = vpop.f32.mrb[7].mxu0 }
 0x1d7   : > { %v795_v39 = vpop.f32.mrb[8].mxu0 }
 0x1d8   : > { %v801_v40 = vadd.f32 %v795_v39, %v728_v38  ;;  %v1592_v41 = vpop.f32.mrb[9].mxu0 }
 0x1d9   : > { %v798_v42 = vpop.f32.mrb[10].mxu0  ;;  %v1689_v41 = vld [vmem:[%s1926_s30 + $0x10] sm:$0xff]  }
 0x1da   : > { %1695 = vtanh.f32 %v801_v40  ;;  %v1593_v43 = vpop.f32.mrb[11].mxu0  ;;  %v1496_v45 = vmul.f32 -1.442695, %v801_v40  ;;  %1585 = vmatmul.mubr.msk.bf16.gmra.mrb[12].mxu1 %vm679_vm4, %v1689_v41 }
 0x1db   : > { %1608 = vmatprep.mubr.msk.bf16.mxu1 %vm1772_vm0, %v1771_v7 }
 0x1dc   : > { %1697 = vpow2.f32 %v1496_v45 }
 0x1e4   : > { %v1696_v44 = vpop.eup %1695 }
 0x1e5   : > { %811 = vrot.lane.b32.xlu0 %v1696_v44, %s1774_s15 }
 0x1e6   : > { %v1698_v46 = vpop.eup %1697 }
 0x1e7   : > { %v805_v47 = vadd.f32 1.0, %v1698_v46 }
 0x1e9   : > { %1699 = vrcp.f32 %v805_v47 }
 0x1f3   : > { %v1700_v48 = vpop.eup %1699 }
 0x1f4   : > { %v809_v51 = vmul.f32 0.0, %v1700_v48 }
 0x257   : > { %v812_v49 = vpop.permute.xlu0 %811 }
 0x258   : > { %v814_v50 = vmul.f32 %v1700_v48, %v812_v49 }
 0x25a   : > { %816 = vrot.lane.b32.xlu0 %v814_v50, %s1775_s16 }
 0x2ad   : > { %v743_v46 = vpop.f32.mrb[12].mxu1 }
 0x2ae   : > { %v1586_v47 = vpop.f32.mrb[13].mxu1 }
 0x2cc   : > { %v817_v52 = vpop.permute.xlu0 %816 }
 0x2cd   : > { %v819_v53 = vadd.f32 %v817_v52, %v809_v51  ;;  %v739_v51 = vadd.f32 %v1954_v36, %v738_v20 }
 0x2cf   : > { %1701 = vtanh.f32 %v819_v53 }
 0x2d9   : > { %v1702_v54 = vpop.eup %1701 }
 0x2da   : > { %822 = vrot.lane.b32.xlu1 %v1702_v54, %s1776_s22 }
 0x34c   : > { %v823_v55 = vpop.permute.xlu1 %822 }
 0x34d   : > { %v825_v56 = vmul.f32 %v1700_v48, %v823_v55  ;;  %v1989_v48 = vpop.f32.mrb[14].mxu1 }
 0x34e   : > { %v1587_v49 = vpop.f32.mrb[15].mxu1 }
 0x34f   : > { %v826_v57 = vpack.c.bf16 %v825_v56, %v825_v56 }
 0x351   : > { %828 = vrot.lane.b32.xlu1 %v826_v57, %s1777_s20 }
 0x3c3   : > { %v829_v58 = vpop.permute.xlu1 %828 }
 0x3c4   : > { %1597 = vmatmul.mubr.msk.bf16.vlgmr.msra.gmra.mrb[12].mxu0 %vm483_vm1, %v829_v58 }
 0x3c5   : > { %1601 = vmatpush3.bf16.msra.mxu0 %v1933_v17  ;;  %1602 = vmatprep.mubr.msk.bf16.mxu0 %vm1772_vm0, %v1771_v7 }
 0x3c6   : > { %1612 = vmatprep.subr.bf16.mxu0 %v1771_v7 }
 0x497   : > { %v867_v60 = vpop.f32.mrb[12].mxu0 }
 0x498   : > { %v873_v61 = vadd.f32 %v867_v60, %v731_v59  ;;  %v1598_v62 = vpop.f32.mrb[13].mxu0 }
 0x499   : > { %v870_v63 = vpop.f32.mrb[14].mxu0 }
 0x49a   : > { %1703 = vtanh.f32 %v873_v61  ;;  %v1599_v0 = vpop.f32.mrb[15].mxu0  ;;  %v1498_v2 = vmul.f32 -1.442695, %v873_v61 }
 0x49c   : > { %1705 = vpow2.f32 %v1498_v2 }
 0x4a4   : > { %v1704_v1 = vpop.eup %1703 }
 0x4a5   : > { %883 = vrot.lane.b32.xlu0 %v1704_v1, %s1774_s15 }
 0x4a6   : > { %v1706_v3 = vpop.eup %1705 }
 0x4a7   : > { %v877_v4 = vadd.f32 1.0, %v1706_v3 }
 0x4a9   : > { %1707 = vrcp.f32 %v877_v4 }
 0x4b3   : > { %v1708_v5 = vpop.eup %1707 }
 0x4b4   : > { %v881_v9 = vmul.f32 %v1708_v5, %v819_v53 }
 0x517   : > { %v884_v6 = vpop.permute.xlu0 %883 }
 0x518   : > { %v886_v8 = vmul.f32 %v1708_v5, %v884_v6 }
 0x51a   : > { %888 = vrot.lane.b32.xlu1 %v886_v8, %s1775_s16  ;;  %v744_v8 = vadd.f32 %v1954_v36, %v743_v46 }
 0x58c   : > { %v889_v10 = vpop.permute.xlu1 %888 }
 0x58d   : > { %v891_v11 = vadd.f32 %v889_v10, %v881_v9 }
 0x58f   : > { %1709 = vtanh.f32 %v891_v11 }
 0x599   : > { %v1710_v13 = vpop.eup %1709 }
 0x59a   : > { %894 = vrot.lane.b32.xlu0 %v1710_v13, %s1776_s22 }
 0x60c   : > { %v895_v14 = vpop.permute.xlu0 %894 }
 0x60d   : > { %v897_v15 = vmul.f32 %v1708_v5, %v895_v14 }
 0x60f   : > { %v898_v16 = vpack.c.bf16 %v897_v15, %v897_v15 }
 0x611   : > { %900 = vrot.lane.b32.xlu1 %v898_v16, %s1777_s20 }
 0x683   : > { %v901_v22 = vpop.permute.xlu1 %900 }
 0x684   : > { %1603 = vmatmul.mubr.msk.bf16.vlgmr.msra.gmra.mrb[16].mxu0 %vm483_vm1, %v901_v22 }
 0x685   : > { %1613 = vmatpush3.bf16.msra.mxu0 %v1933_v17  ;;  %1614 = vmatprep.mubr.msk.bf16.mxu0 %vm1772_vm0, %v1771_v7 }
 0x686   : > { %1624 = vmatprep.subr.bf16.mxu0 %v1771_v7 }
 0x757   : > { %v939_v24 = vpop.f32.mrb[16].mxu0 }
 0x758   : > { %v945_v25 = vadd.f32 %v939_v24, %v736_v23  ;;  %v1604_v26 = vpop.f32.mrb[17].mxu0 }
 0x759   : > { %v942_v27 = vpop.f32.mrb[18].mxu0 }
 0x75a   : > { %1711 = vtanh.f32 %v945_v25  ;;  %v1605_v28 = vpop.f32.mrb[19].mxu0  ;;  %v1500_v30 = vmul.f32 -1.442695, %v945_v25 }
 0x75c   : > { %1713 = vpow2.f32 %v1500_v30  ;;  %v1690_v30 = vld [vmem:[%s2080_s8] sm:$0xff]  }
 0x764   : > { %v1712_v29 = vpop.eup %1711 }
 0x765   : > { %955 = vrot.lane.b32.xlu0 %v1712_v29, %s1774_s15  ;;  %v1487_v29 = vld [vmem:[%s2082_s10] ss:$0 sm:$0xff] }
 0x766   : > { %v1714_v31 = vpop.eup %1713 }
 0x767   : > { %v949_v32 = vadd.f32 1.0, %v1714_v31  ;;  %v651_v31 = vadd.f32 %v1487_v29, %v1949_v33  ;;  %v747_v33 = vadd.f32 %v1954_v36, %v1989_v48 }
 0x769   : > { %1715 = vrcp.f32 %v949_v32 }
 0x773   : > { %v1716_v34 = vpop.eup %1715 }
 0x774   : > { %v953_v38 = vmul.f32 %v1716_v34, %v891_v11 }
 0x7d7   : > { %v956_v35 = vpop.permute.xlu0 %955 }
 0x7d8   : > { %v958_v37 = vmul.f32 %v1716_v34, %v956_v35  ;;  %v2022_v35 = vmax.f32 %v651_v31, 0.0 }
 0x7da   : > { %960 = vrot.lane.b32.xlu1 %v958_v37, %s1775_s16  ;;  %v1245_v37 = vpack.c.bf16 %v2022_v35, %v2022_v35 }
 0x84c   : > { %v961_v39 = vpop.permute.xlu1 %960 }
 0x84d   : > { %v963_v40 = vadd.f32 %v961_v39, %v953_v38 }
 0x84f   : > { %1717 = vtanh.f32 %v963_v40 }
 0x859   : > { %v1718_v42 = vpop.eup %1717 }
 0x85a   : > { %966 = vrot.lane.b32.xlu0 %v1718_v42, %s1776_s22 }
 0x8cc   : > { %v967_v43 = vpop.permute.xlu0 %966 }
 0x8cd   : > { %v969_v44 = vmul.f32 %v1716_v34, %v967_v43  ;;  %v1691_v34 = vld [vmem:[%s2080_s8 + $0x8] sm:$0xff]  }
 0x8cf   : > { %v970_v45 = vpack.c.bf16 %v969_v44, %v969_v44 }
 0x8d1   : > { %972 = vrot.lane.b32.xlu1 %v970_v45, %s1777_s20 }
 0x943   : > { %v973_v50 = vpop.permute.xlu1 %972 }
 0x944   : > { %1609 = vmatmul.mubr.msk.bf16.vlgmr.msra.gmra.mrb[16].mxu1 %vm483_vm1, %v973_v50 }
 0x945   : > { %1619 = vmatpush3.bf16.msra.mxu1 %v1933_v17  ;;  %1620 = vmatprep.mubr.msk.bf16.mxu1 %vm1772_vm0, %v1771_v7 }
 0x946   : > { %1630 = vmatprep.subr.bf16.mxu1 %v1771_v7 }
 0xa17   : > { %v1011_v52 = vpop.f32.mrb[16].mxu1 }
 0xa18   : > { %v1017_v53 = vadd.f32 %v1011_v52, %v739_v51  ;;  %v1610_v54 = vpop.f32.mrb[17].mxu1 }
 0xa19   : > { %v1014_v55 = vpop.f32.mrb[18].mxu1 }
 0xa1a   : > { %1719 = vtanh.f32 %v1017_v53  ;;  %v1611_v56 = vpop.f32.mrb[19].mxu1  ;;  %v1502_v58 = vmul.f32 -1.442695, %v1017_v53 }
 0xa1b   : > { %v1692_v56 = vld [vmem:[%s2079_s7] sm:$0xff]  }
 0xa1c   : > { %1721 = vpow2.f32 %v1502_v58 }
 0xa24   : > { %v1720_v57 = vpop.eup %1719 }
 0xa25   : > { %1027 = vrot.lane.b32.xlu0 %v1720_v57, %s1774_s15 }
 0xa26   : > { %v1722_v59 = vpop.eup %1721 }
 0xa27   : > { %v1021_v17 = vadd.f32 1.0, %v1722_v59 }
 0xa29   : > { %1723 = vrcp.f32 %v1021_v17 }
 0xa33   : > { %v1724_v60 = vpop.eup %1723 }
 0xa34   : > { %v1025_v63 = vmul.f32 %v1724_v60, %v963_v40 }
 0xa97   : > { %v1028_v61 = vpop.permute.xlu0 %1027 }
 0xa98   : > { %v1030_v62 = vmul.f32 %v1724_v60, %v1028_v61  ;;  %v1507_v61 = vld [vmem:[%s2082_s10 + $0x2] ss:$0 sm:$0xff] }
 0xa9a   : > { %1032 = vrot.lane.b32.xlu1 %v1030_v62, %s1775_s16 }
 0xb0c   : > { %v1033_v0 = vpop.permute.xlu1 %1032 }
 0xb0d   : > { %v1035_v1 = vadd.f32 %v1033_v0, %v1025_v63 }
 0xb0f   : > { %1725 = vtanh.f32 %v1035_v1 }
 0xb19   : > { %v1726_v2 = vpop.eup %1725 }
 0xb1a   : > { %1038 = vrot.lane.b32.xlu0 %v1726_v2, %s1776_s22 }
 0xb8c   : > { %v1039_v3 = vpop.permute.xlu0 %1038 }
 0xb8d   : > { %v1041_v4 = vmul.f32 %v1724_v60, %v1039_v3 }
 0xb8f   : > { %v1042_v5 = vpack.c.bf16 %v1041_v4, %v1041_v4 }
 0xb91   : > { %1044 = vrot.lane.b32.xlu1 %v1042_v5, %s1777_s20 }
 0xc03   : > { %v1045_v6 = vpop.permute.xlu1 %1044 }
 0xc04   : > { %1615 = vmatmul.mubr.msk.bf16.vlgmr.msra.gmra.mrb[20].mxu0 %vm483_vm1, %v1045_v6 }
 0xc05   : > { %1626 = vmatprep.mubr.msk.bf16.mxu0 %vm1772_vm0, %v1771_v7  ;;  %1625 = vmatpush3.bf16.msra.mxu0 %v1692_v56 }
 0xc06   : > { %1638 = vmatprep.subr.bf16.mxu0 %v1771_v7 }
 0xcd7   : > { %v1083_v9 = vpop.f32.mrb[20].mxu0 }
 0xcd8   : > { %v1089_v10 = vadd.f32 %v1083_v9, %v744_v8  ;;  %v1616_v11 = vpop.f32.mrb[21].mxu0 }
 0xcd9   : > { %v1086_v12 = vpop.f32.mrb[22].mxu0 }
 0xcda   : > { %1727 = vtanh.f32 %v1089_v10  ;;  %v1617_v13 = vpop.f32.mrb[23].mxu0  ;;  %v1504_v15 = vmul.f32 -1.442695, %v1089_v10  ;;  %v1693_v10 = vld [vmem:[%s2081_s9] sm:$0xff]   ;;  %v1694_v12 = vld [vmem:[%s2081_s9 + $0x8] sm:$0xff]  }
 0xcdc   : > { %1729 = vpow2.f32 %v1504_v15 }
 0xce4   : > { %v1728_v14 = vpop.eup %1727 }
 0xce5   : > { %1099 = vrot.lane.b32.xlu0 %v1728_v14, %s1774_s15 }
 0xce6   : > { %v1730_v16 = vpop.eup %1729 }
 0xce7   : > { %v1093_v18 = vadd.f32 1.0, %v1730_v16 }
 0xce9   : > { %1731 = vrcp.f32 %v1093_v18 }
 0xcf3   : > { %v1732_v19 = vpop.eup %1731 }
 0xcf4   : > { %v1097_v22 = vmul.f32 %v1732_v19, %v1035_v1 }
 0xd57   : > { %v1100_v20 = vpop.permute.xlu0 %1099 }
 0xd58   : > { %v1102_v21 = vmul.f32 %v1732_v19, %v1100_v20  ;;  %v1514_v20 = vld [vmem:[%s2082_s10 + $0x3] ss:$0 sm:$0xff] }
 0xd5a   : > { %1104 = vrot.lane.b32.xlu1 %v1102_v21, %s1775_s16 }
 0xdcc   : > { %v1105_v23 = vpop.permute.xlu1 %1104 }
 0xdcd   : > { %v1107_v24 = vadd.f32 %v1105_v23, %v1097_v22 }
 0xdcf   : > { %1733 = vtanh.f32 %v1107_v24 }
 0xdd9   : > { %v1734_v25 = vpop.eup %1733 }
 0xdda   : > { %1110 = vrot.lane.b32.xlu0 %v1734_v25, %s1776_s22 }
 0xe4c   : > { %v1111_v26 = vpop.permute.xlu0 %1110 }
 0xe4d   : > { %v1113_v27 = vmul.f32 %v1732_v19, %v1111_v26 }
 0xe4f   : > { %v1114_v28 = vpack.c.bf16 %v1113_v27, %v1113_v27 }
 0xe51   : > { %1116 = vrot.lane.b32.xlu1 %v1114_v28, %s1777_s20 }
 0xec3   : > { %v1117_v32 = vpop.permute.xlu1 %1116 }
 0xec4   : > { %1621 = vmatmul.mubr.msk.bf16.vlgmr.msra.gmra.mrb[20].mxu1 %vm483_vm1, %v1117_v32 }
 0xec5   : > { %1631 = vmatpush3.bf16.msra.mxu1 %v1690_v30  ;;  %1634 = vmatprep.mubr.msk.bf16.mxu1 %vm1772_vm0, %v1771_v7 }
 0xec6   : > { %1632 = vmatprep.subr.bf16.mxu1 %v1771_v7 }
 0xec9   : > { %1633 = vmatpush3.bf16.msra.mxu1 %v1691_v34 }
 0xecc   : > { %1635 = vmatmul.mubr.msk.bf16.vlgmr.msra.gmra.mrb[24].mxu1 %vm548_vm2, %v1245_v37 }
 0xf97   : > { %v1155_v38 = vpop.f32.mrb[20].mxu1 }
 0xf98   : > { %v1161_v39 = vadd.f32 %v1155_v38, %v747_v33  ;;  %v1622_v40 = vpop.f32.mrb[21].mxu1 }
 0xf99   : > { %v1158_v41 = vpop.f32.mrb[22].mxu1 }
 0xf9a   : > { %1735 = vtanh.f32 %v1161_v39  ;;  %v1623_v42 = vpop.f32.mrb[23].mxu1  ;;  %v1506_v49 = vmul.f32 -1.442695, %v1161_v39 }
 0xf9c   : > { %1737 = vpow2.f32 %v1506_v49 }
 0xf9f   : > { %v1303_v43 = vpop.f32.mrb[24].mxu1 }
 0xfa0   : > { %v1636_v44 = vpop.f32.mrb[25].mxu1 }
 0xfa1   : > { %v1306_v45 = vpop.f32.mrb[26].mxu1 }
 0xfa2   : > { %v1637_v46 = vpop.f32.mrb[27].mxu1 }
 0xfa4   : > { %v1736_v47 = vpop.eup %1735 }
 0xfa5   : > { %1171 = vrot.lane.b32.xlu0 %v1736_v47, %s1774_s15 }
 0xfa6   : > { %v1738_v50 = vpop.eup %1737 }
 0xfa7   : > { %v1165_v51 = vadd.f32 1.0, %v1738_v50 }
 0xfa9   : > { %1739 = vrcp.f32 %v1165_v51 }
 0xfb3   : > { %v1740_v52 = vpop.eup %1739 }
 0xfb4   : > { %v1169_v53 = vmul.f32 %v1740_v52, %v1107_v24 }
0x1017   : > { %v1172_v36 = vpop.permute.xlu0 %1171 }
0x1018   : > { %v1174_v48 = vmul.f32 %v1740_v52, %v1172_v36 }
0x101a   : > { %1176 = vrot.lane.b32.xlu1 %v1174_v48, %s1775_s16 }
0x108c   : > { %v1177_v54 = vpop.permute.xlu1 %1176 }
0x108d   : > { %v1179_v55 = vadd.f32 %v1177_v54, %v1169_v53 }
0x108f   : > { %1741 = vtanh.f32 %v1179_v55 }
0x1099   : > { %v1742_v57 = vpop.eup %1741 }
0x109a   : > { %1182 = vrot.lane.b32.xlu0 %v1742_v57, %s1776_s22 }
0x110c   : > { %v1183_v58 = vpop.permute.xlu0 %1182 }
0x110d   : > { %v1185_v59 = vmul.f32 %v1740_v52, %v1183_v58 }
0x110f   : > { %v1186_v17 = vpack.c.bf16 %v1185_v59, %v1185_v59 }
0x1111   : > { %1194 = vrot.lane.b32.xlu1 %v1186_v17, %s1777_s20 }
0x1183   : > { %v1195_v60 = vpop.permute.xlu1 %1194 }
0x1184   : > { %1627 = vmatmul.mubr.msk.bf16.vlgmr.msra.gmra.mrb[24].mxu0 %vm483_vm1, %v1195_v60 }
0x1185   : > { %1642 = vmatprep.mubr.msk.bf16.mxu0 %vm1772_vm0, %v1771_v7  ;;  %1639 = vmatpush3.bf16.msra.mxu0 %v1693_v10 }
0x1186   : > { %1640 = vmatprep.subr.bf16.mxu0 %v1771_v7 }
0x1189   : > { %1641 = vmatpush3.bf16.msra.mxu0 %v1694_v12 }
0x1257   : > { %v1239_v62 = vpop.f32.mrb[24].mxu0 }
0x1258   : > { %v1240_v63 = vadd.f32 %v1507_v61, %v1239_v62  ;;  %v1628_v0 = vpop.f32.mrb[25].mxu0 }
0x1259   : > { %v1242_v1 = vpop.f32.mrb[26].mxu0 }
0x125a   : > { %1263 = vrot.lane.b32.xlu0 %v1240_v63, %s1774_s15  ;;  %v1629_v2 = vpop.f32.mrb[27].mxu0 }
0x12cc   : > { %v1264_v3 = vpop.permute.xlu0 %1263 }
0x12cd   : > { %v1304_v4 = vadd.f32 %v1303_v43, %v1264_v3 }
0x12cf   : > { %v1513_v5 = vmul.f32 -1.442695, %v1304_v4 }
0x12d1   : > { %1743 = vpow2.f32 %v1513_v5 }
0x12db   : > { %v1744_v6 = vpop.eup %1743 }
0x12dc   : > { %v1312_v8 = vadd.f32 1.0, %v1744_v6 }
0x12de   : > { %1745 = vrcp.f32 %v1312_v8 }
0x12e8   : > { %v1746_v9 = vpop.eup %1745 }
0x12e9   : > { %1317 = vperm.xlu1 %1679, %v1746_v9   ;;  %v1321_v11 = vsub.f32 1.0, %v1746_v9 }
0x12eb   : > { %1324 = vperm.xlu0 %1680, %v1321_v11  }
0x1368   : > { %v1318_v13 = vpop.permute.xlu1 %1317 }
0x1369   : > { %v1320_v15 = vmul.f32 %v1318_v13, %v2022_v35 }
0x136a   : > { %v1325_v14 = vpop.permute.xlu0 %1324 }
0x136b   : > { %v1327_v16 = vmul.f32 %v1325_v14, %v1240_v63 }
0x136d   : > { %v1328_v18 = vadd.f32 %v1327_v16, %v1320_v15 }
0x136f   : > { %v1329_v19 = vpack.c.bf16 %v1328_v18, %v1328_v18 }
0x1371   : > { %1643 = vmatmul.mubr.msk.bf16.vlgmr.msra.gmra.mrb[28].mxu0 %vm548_vm2, %v1329_v19 }
0x1444   : > { %v1387_v21 = vpop.f32.mrb[28].mxu0 }
0x1445   : > { %v1388_v7 = vadd.f32 %v1514_v20, %v1387_v21  ;;  %v1644_v22 = vpop.f32.mrb[29].mxu0 }
0x1446   : > { %v1390_v23 = vpop.f32.mrb[30].mxu0 }
0x1447   : > { %v1393_v24 = vpack.c.bf16 %v1388_v7, %v1388_v7  ;;  %v1645_v25 = vpop.f32.mrb[31].mxu0 }
0x1449   : > { %1395 = vst.msk [vmem:[%s462_s29] sm:$0xf] %vm1394_vm5, %v1393_v24 }
0x144a PF: > { %p18_p9 = scmp.ge.s32.totalorder %s1857_s21, 4   ;;  %s2084_s17 = smov %s1765_s18 }
0x144b   : > { %s2085_s18 = smov %s1866_s24  ;;  %s2086_s19 = smov %s1857_s21 }
0x144c   :  { %20 = sbr.rel (!%p18_p9) target bundleno = 2 (0x2), region = 144 }

</bundles_post_ra>
